<compile_context>
chip_gen: v6e
topology: v6e:2x2x1
jax: 0.10.0
libtpu: 0.0.40
codegen_flags: <defaults>
</compile_context>

<pallas_src>
import functools

import jax
import jax.numpy as jnp
from jax.experimental import pallas as pl
from jax.experimental.pallas import tpu as pltpu


# ---------------------------------------------------------------------------
# In-kernel helpers (all f32 VPU math)
# ---------------------------------------------------------------------------
def _layernorm(x, w, b, eps=1e-6):
    # PyTorch LayerNorm (biased variance); Stage uses eps=1e-6.
    mu = jnp.mean(x, axis=-1, keepdims=True)
    var = jnp.mean((x - mu) ** 2, axis=-1, keepdims=True)
    return (x - mu) * jax.lax.rsqrt(var + eps) * w + b


def _gelu_exact(x):
    # nn.GELU() default = exact erf-based GELU.
    return 0.5 * x * (1.0 + jax.lax.erf(x * 0.7071067811865476))


def _softmax_lastdim(s):
    # Exact divide (argsort on downstream cls-attn is tie-sensitive).
    s = s - jnp.max(s, axis=-1, keepdims=True)
    e = jnp.exp(s)
    return e / jnp.sum(e, axis=-1, keepdims=True)


# ---------------------------------------------------------------------------
# One transformer Block per grid step; grid = (batch, block)
# ---------------------------------------------------------------------------
def _stage_block_kernel(x_ref,
                        ln1w, ln1b, qkvw, qkvb, projw, projb,
                        ln2w, ln2b, fc1w, fc1b, fc2w, fc2b,
                        xo_ref, glb_ref,
                        *, seq, num_heads, alpha):
    l = pl.program_id(1)
    C = x_ref.shape[-1]
    HD = C // num_heads
    scale = HD ** (-0.5)
    bf16 = jnp.bfloat16

    @pl.when(l == 0)
    def _():
        xo_ref[...] = x_ref[...]
        glb_ref[...] = jnp.zeros_like(glb_ref)

    x = xo_ref[...]                                   # (N, C) f32, VMEM-resident across blocks

    # ---------------- Attention ----------------
    h = _layernorm(x, ln1w[...], ln1b[...])
    qkv = (jnp.dot(h.astype(bf16), qkvw[...],
                   preferred_element_type=jnp.float32) + qkvb[...])   # (N, 3C) f32

    head_outs = []
    cls_sum = jnp.zeros((1, seq), jnp.float32)
    # Tiny static loop over heads only (batch lives on the grid); head
    # separation along the feature axis is inherently an HD-wide lane slice.
    for hh in range(num_heads):
        q = qkv[:, hh * HD:(hh + 1) * HD]                              # (N, HD)
        k = qkv[:, C + hh * HD:C + (hh + 1) * HD]
        v = qkv[:, 2 * C + hh * HD:2 * C + (hh + 1) * HD]
        s = jnp.dot(q.astype(bf16), k.T.astype(bf16),
                    preferred_element_type=jnp.float32) * scale        # (N, N)
        p = _softmax_lastdim(s)
        cls_sum = cls_sum + p[0:1, :]                                  # defer the [1:] slice
        head_outs.append(jnp.dot(p.astype(bf16), v.astype(bf16),
                                 preferred_element_type=jnp.float32))
    attn = jnp.concatenate(head_outs, axis=-1)                         # (N, C), values only
    attn = (jnp.dot(attn.astype(bf16), projw[...],
                    preferred_element_type=jnp.float32) + projb[...])
    x = x + attn                                                       # residual

    # ---------------- MLP ----------------
    h2 = _layernorm(x, ln2w[...], ln2b[...])
    m = (jnp.dot(h2.astype(bf16), fc1w[...],
                 preferred_element_type=jnp.float32) + fc1b[...])
    m = _gelu_exact(m)
    m = (jnp.dot(m.astype(bf16), fc2w[...],
                 preferred_element_type=jnp.float32) + fc2b[...])
    x = x + m                                                          # residual

    xo_ref[...] = x

    # ---------------- glb_cls_attn recurrence ----------------
    cls_attn = cls_sum[:, 1:] * (1.0 / num_heads)                      # (1, N-1)
    glb_ref[...] = alpha * glb_ref[...] + (1.0 - alpha) * cls_attn


def run_stage_blocks(x, bp, *, num_heads, alpha):
    """x: (B, N, C); bp: dict of block-stacked weights (L, ...) ->
       (x_out (B, N, C), glb_cls_attn (B, N-1))."""
    B, N, C = x.shape
    L = bp['qkv_w'].shape[0]
    x = x.astype(jnp.float32)

    def f32(w):
        return w.astype(jnp.float32)

    def b16(w):
        return w.astype(jnp.bfloat16)   # halves per-block weight DMA; f32 accumulate on MXU

    weights = [
        f32(bp['ln1_w']), f32(bp['ln1_b']),
        b16(bp['qkv_w']), f32(bp['qkv_b']),
        b16(bp['proj_w']), f32(bp['proj_b']),
        f32(bp['ln2_w']), f32(bp['ln2_b']),
        b16(bp['fc1_w']), f32(bp['fc1_b']),
        b16(bp['fc2_w']), f32(bp['fc2_b']),
    ]
    # One block's weights per grid step, streamed / double-buffered by Pallas.
    w_specs = [pl.BlockSpec((None,) + w.shape[1:], lambda b, l: (l, 0, 0))
               for w in weights]

    kern = functools.partial(_stage_block_kernel, seq=N,
                             num_heads=num_heads, alpha=alpha)

    x_out, glb = pl.pallas_call(
        kern,
        out_shape=(jax.ShapeDtypeStruct((B, N, C), jnp.float32),
                   jax.ShapeDtypeStruct((B, 1, N - 1), jnp.float32)),
        grid=(B, L),
        in_specs=[pl.BlockSpec((None, N, C), lambda b, l: (b, 0, 0))] + w_specs,
        out_specs=(pl.BlockSpec((None, N, C), lambda b, l: (b, 0, 0)),
                   pl.BlockSpec((None, 1, N - 1), lambda b, l: (b, 0, 0))),
        compiler_params=pltpu.CompilerParams(
            dimension_semantics=("parallel", "arbitrary"),
            vmem_limit_bytes=64 * 1024 * 1024),
    )(x, *weights)
    return x_out, glb.reshape(B, N - 1)


# ---------------------------------------------------------------------------
# Stage forward (JAX glue around the Pallas kernel)
# ---------------------------------------------------------------------------
def stage_forward(x, glb_cls_attn, params, *, split_ratio, alpha, num_heads):
    B, N, C = x.shape
    if split_ratio is not None:
        cls_token = x[:, :1, :]
        tokens = x[:, 1:, :]
        Nt = N - 1
        # TODO(synk): argsort/gather token re-ordering has no clean Pallas TPU primitive; done in JAX glue.
        order = jnp.argsort(-glb_cls_attn, axis=1)                     # descending
        gather_idx = jnp.broadcast_to(order[:, :, None], (B, Nt, C))
        tokens = jnp.take_along_axis(tokens, gather_idx, axis=1)
        split_n = int(Nt * split_ratio)
        split_tokens = tokens[:, :split_n, :].reshape(B * split_n, C)
        # split_proj left to XLA: a standalone pallas_call costs more in launch
        # + DMA setup than this tiny matmul (perf-review item); bf16 MXU operands.
        split_tokens = (jnp.dot(split_tokens.astype(jnp.bfloat16),
                                params['split_proj_w'].astype(jnp.bfloat16),
                                preferred_element_type=jnp.float32)
                        + params['split_proj_b'])
        split_tokens = split_tokens.reshape(B, split_n * 4, C)
        keep_tokens = tokens[:, split_n:, :]
        x = jnp.concatenate([cls_token, split_tokens, keep_tokens], axis=1)

    # All transformer Blocks + alpha-blended cls-attn recurrence in one
    # pallas_call (x stays VMEM-resident across blocks; weights streamed).
    x_out, glb = run_stage_blocks(x, params['blocks'],
                                  num_heads=num_heads, alpha=alpha)
    return x_out, glb


# ---------------------------------------------------------------------------
# Deterministic parameter construction (synthetic weights, stacked over blocks)
# ---------------------------------------------------------------------------
def make_stage_params(key, C, num_block, mlp_ratio):
    hidden = int(C * mlp_ratio)
    ks = jax.random.split(key, 4 * num_block + 1)

    def nrm(k, shape):
        return (jax.random.normal(k, shape) * 0.02).astype(jnp.float32)

    blocks = {
        'ln1_w': jnp.ones((num_block, 1, C), jnp.float32),
        'ln1_b': jnp.zeros((num_block, 1, C), jnp.float32),
        'qkv_w': jnp.stack([nrm(ks[1 + 4 * i + 0], (C, 3 * C)) for i in range(num_block)]),
        'qkv_b': jnp.zeros((num_block, 1, 3 * C), jnp.float32),
        'proj_w': jnp.stack([nrm(ks[1 + 4 * i + 1], (C, C)) for i in range(num_block)]),
        'proj_b': jnp.zeros((num_block, 1, C), jnp.float32),
        'ln2_w': jnp.ones((num_block, 1, C), jnp.float32),
        'ln2_b': jnp.zeros((num_block, 1, C), jnp.float32),
        'fc1_w': jnp.stack([nrm(ks[1 + 4 * i + 2], (C, hidden)) for i in range(num_block)]),
        'fc1_b': jnp.zeros((num_block, 1, hidden), jnp.float32),
        'fc2_w': jnp.stack([nrm(ks[1 + 4 * i + 3], (hidden, C)) for i in range(num_block)]),
        'fc2_b': jnp.zeros((num_block, 1, C), jnp.float32),
    }
    return {
        'split_proj_w': nrm(ks[0], (C, 4 * C)),
        'split_proj_b': jnp.zeros((1, 4 * C), jnp.float32),
        'blocks': blocks,
    }


# ---------------------------------------------------------------------------
if __name__ == "__main__":
    # Small shapes consistent with Stage.forward: x (B, N, C), glb_cls_attn (B, N-1)
    B, N, C = 2, 9, 32            # 1 cls token + 8 patch tokens, embed_dim=32
    num_heads = 4                 # C must be divisible by num_heads
    num_block = 2
    mlp_ratio = 4.0
    split_ratio = 0.5
    alpha = 0.5

    root = jax.random.PRNGKey(0)
    k_x, k_attn, k_par = jax.random.split(root, 3)

    x = jax.random.normal(k_x, (B, N, C), jnp.float32)
    glb_cls_attn = jax.random.uniform(k_attn, (B, N - 1), jnp.float32)
    params = make_stage_params(k_par, C, num_block, mlp_ratio)

    fwd = jax.jit(functools.partial(stage_forward,
                                    split_ratio=split_ratio,
                                    alpha=alpha,
                                    num_heads=num_heads))
    x_out, glb_out = fwd(x, glb_cls_attn, params)
    jax.block_until_ready((x_out, glb_out))

    # After splitting: N_new = 1 + 4*split_n + (N-1-split_n) = 1 + 16 + 4 = 21
    assert x_out.shape == (B, 21, C), x_out.shape
    assert glb_out.shape == (B, 20), glb_out.shape
    print("KERNEL_OK")
</pallas_src>

<mosaic_0001>
module attributes {stable_mosaic.version = 11 : i64} {
  func.func @_stage_block_kernel(%arg0: i32, %arg1: i32, %arg2: memref<1x21x32xf32, #tpu.memory_space<vmem>>, %arg3: memref<1x1x32xf32, #tpu.memory_space<vmem>>, %arg4: memref<1x1x32xf32, #tpu.memory_space<vmem>>, %arg5: memref<1x32x96xbf16, #tpu.memory_space<vmem>>, %arg6: memref<1x1x96xf32, #tpu.memory_space<vmem>>, %arg7: memref<1x32x32xbf16, #tpu.memory_space<vmem>>, %arg8: memref<1x1x32xf32, #tpu.memory_space<vmem>>, %arg9: memref<1x1x32xf32, #tpu.memory_space<vmem>>, %arg10: memref<1x1x32xf32, #tpu.memory_space<vmem>>, %arg11: memref<1x32x128xbf16, #tpu.memory_space<vmem>>, %arg12: memref<1x1x128xf32, #tpu.memory_space<vmem>>, %arg13: memref<1x128x32xbf16, #tpu.memory_space<vmem>>, %arg14: memref<1x1x32xf32, #tpu.memory_space<vmem>>, %arg15: memref<1x21x32xf32, #tpu.memory_space<vmem>>, %arg16: memref<1x1x20xf32, #tpu.memory_space<vmem>>) attributes {dimension_semantics = [#tpu.dimension_semantics<parallel>, #tpu.dimension_semantics<arbitrary>], iteration_bounds = array<i64: 2, 2>, scalar_prefetch = 0 : i64, scratch_operands = 0 : i64, tpu.core_type = #tpu.core_type<tc>, window_params = [{transform_indices = @transform_0, window_bounds = array<i64: 1, 21, 32>}, {transform_indices = @transform_1, window_bounds = array<i64: 1, 1, 32>}, {transform_indices = @transform_2, window_bounds = array<i64: 1, 1, 32>}, {transform_indices = @transform_3, window_bounds = array<i64: 1, 32, 96>}, {transform_indices = @transform_4, window_bounds = array<i64: 1, 1, 96>}, {transform_indices = @transform_5, window_bounds = array<i64: 1, 32, 32>}, {transform_indices = @transform_6, window_bounds = array<i64: 1, 1, 32>}, {transform_indices = @transform_7, window_bounds = array<i64: 1, 1, 32>}, {transform_indices = @transform_8, window_bounds = array<i64: 1, 1, 32>}, {transform_indices = @transform_9, window_bounds = array<i64: 1, 32, 128>}, {transform_indices = @transform_10, window_bounds = array<i64: 1, 1, 128>}, {transform_indices = @transform_11, window_bounds = array<i64: 1, 128, 32>}, {transform_indices = @transform_12, window_bounds = array<i64: 1, 1, 32>}, {transform_indices = @transform_13, window_bounds = array<i64: 1, 21, 32>}, {transform_indices = @transform_14, window_bounds = array<i64: 1, 1, 20>}]} {
    %c0_i32 = arith.constant 0 : i32
    %0 = arith.cmpi eq, %arg1, %c0_i32 : i32
    %1 = arith.extui %0 : i1 to i32
    %c0_i32_0 = arith.constant 0 : i32
    %2 = arith.cmpi ne, %1, %c0_i32_0 : i32
    scf.if %2 {
      %c0_88 = arith.constant 0 : index
      %c0_89 = arith.constant 0 : index
      %c0_90 = arith.constant 0 : index
      %209 = vector.load %arg2[%c0_88, %c0_89, %c0_90] : memref<1x21x32xf32, #tpu.memory_space<vmem>>, vector<1x21x32xf32>
      %210 = vector.shape_cast %209 : vector<1x21x32xf32> to vector<21x32xf32>
      %c0_91 = arith.constant 0 : index
      %c0_92 = arith.constant 0 : index
      %c0_93 = arith.constant 0 : index
      %211 = vector.load %arg15[%c0_91, %c0_92, %c0_93] : memref<1x21x32xf32, #tpu.memory_space<vmem>>, vector<1x21x32xf32>
      %212 = vector.shape_cast %211 : vector<1x21x32xf32> to vector<21x32xf32>
      %213 = vector.shape_cast %210 : vector<21x32xf32> to vector<1x21x32xf32>
      tpu.vector_store %arg15[%c0_91, %c0_92, %c0_93], %213 {strides = array<i32>} : memref<1x21x32xf32, #tpu.memory_space<vmem>>, vector<1x21x32xf32>,
      %cst_94 = arith.constant 0.000000e+00 : f32
      %214 = vector.broadcast %cst_94 : f32 to vector<1x20xf32>
      %c0_95 = arith.constant 0 : index
      %c0_96 = arith.constant 0 : index
      %c0_97 = arith.constant 0 : index
      %215 = vector.load %arg16[%c0_95, %c0_96, %c0_97] : memref<1x1x20xf32, #tpu.memory_space<vmem>>, vector<1x1x20xf32>
      %216 = vector.shape_cast %215 : vector<1x1x20xf32> to vector<1x20xf32>
      %217 = vector.shape_cast %214 : vector<1x20xf32> to vector<1x1x20xf32>
      tpu.vector_store %arg16[%c0_95, %c0_96, %c0_97], %217 {strides = array<i32>} : memref<1x1x20xf32, #tpu.memory_space<vmem>>, vector<1x1x20xf32>,
    } else {
    }
    %c0 = arith.constant 0 : index
    %c0_1 = arith.constant 0 : index
    %c0_2 = arith.constant 0 : index
    %3 = vector.load %arg15[%c0, %c0_1, %c0_2] : memref<1x21x32xf32, #tpu.memory_space<vmem>>, vector<1x21x32xf32>
    %4 = vector.shape_cast %3 : vector<1x21x32xf32> to vector<21x32xf32>
    %c0_3 = arith.constant 0 : index
    %c0_4 = arith.constant 0 : index
    %c0_5 = arith.constant 0 : index
    %5 = vector.load %arg3[%c0_3, %c0_4, %c0_5] : memref<1x1x32xf32, #tpu.memory_space<vmem>>, vector<1x1x32xf32>
    %6 = vector.shape_cast %5 : vector<1x1x32xf32> to vector<1x32xf32>
    %c0_6 = arith.constant 0 : index
    %c0_7 = arith.constant 0 : index
    %c0_8 = arith.constant 0 : index
    %7 = vector.load %arg4[%c0_6, %c0_7, %c0_8] : memref<1x1x32xf32, #tpu.memory_space<vmem>>, vector<1x1x32xf32>
    %8 = vector.shape_cast %7 : vector<1x1x32xf32> to vector<1x32xf32>
    %cst = arith.constant dense<0.000000e+00> : vector<21xf32>
    %9 = vector.multi_reduction <add>, %4, %cst [1] : vector<21x32xf32> to vector<21xf32>
    %10 = vector.shape_cast %9 : vector<21xf32> to vector<21x1xf32>
    %cst_9 = arith.constant 3.200000e+01 : f32
    %11 = vector.broadcast %cst_9 : f32 to vector<21x1xf32>
    %12 = arith.divf %10, %11 : vector<21x1xf32>
    %13 = vector.broadcast %12 : vector<21x1xf32> to vector<21x32xf32>
    %14 = arith.subf %4, %13 : vector<21x32xf32>
    %15 = arith.mulf %14, %14 : vector<21x32xf32>
    %cst_10 = arith.constant dense<0.000000e+00> : vector<21xf32>
    %16 = vector.multi_reduction <add>, %15, %cst_10 [1] : vector<21x32xf32> to vector<21xf32>
    %17 = vector.shape_cast %16 : vector<21xf32> to vector<21x1xf32>
    %cst_11 = arith.constant 3.200000e+01 : f32
    %18 = vector.broadcast %cst_11 : f32 to vector<21x1xf32>
    %19 = arith.divf %17, %18 : vector<21x1xf32>
    %20 = vector.broadcast %12 : vector<21x1xf32> to vector<21x32xf32>
    %21 = arith.subf %4, %20 : vector<21x32xf32>
    %cst_12 = arith.constant 9.99999997E-7 : f32
    %22 = vector.broadcast %cst_12 : f32 to vector<21x1xf32>
    %23 = arith.addf %19, %22 : vector<21x1xf32>
    %24 = math.rsqrt %23 : vector<21x1xf32>
    %25 = vector.broadcast %24 : vector<21x1xf32> to vector<21x32xf32>
    %26 = arith.mulf %21, %25 : vector<21x32xf32>
    %27 = vector.broadcast %6 : vector<1x32xf32> to vector<21x32xf32>
    %28 = arith.mulf %26, %27 : vector<21x32xf32>
    %29 = vector.broadcast %8 : vector<1x32xf32> to vector<21x32xf32>
    %30 = arith.addf %28, %29 : vector<21x32xf32>
    %31 = arith.truncf %30 : vector<21x32xf32> to vector<21x32xbf16>
    %c0_13 = arith.constant 0 : index
    %c0_14 = arith.constant 0 : index
    %c0_15 = arith.constant 0 : index
    %32 = vector.load %arg5[%c0_13, %c0_14, %c0_15] : memref<1x32x96xbf16, #tpu.memory_space<vmem>>, vector<1x32x96xbf16>
    %33 = vector.shape_cast %32 : vector<1x32x96xbf16> to vector<32x96xbf16>
    %cst_16 = arith.constant dense<0.000000e+00> : vector<21x96xf32>
    %34 = tpu.matmul %31, %33, %cst_16 {dimension_numbers = #tpu.dot_dimension_numbers<[1], [0], [0], [1], [0, 0, 1, 1], [], []>} : vector<21x32xbf16>, vector<32x96xbf16>, vector<21x96xf32> -> vector<21x96xf32>
    %c0_17 = arith.constant 0 : index
    %c0_18 = arith.constant 0 : index
    %c0_19 = arith.constant 0 : index
    %35 = vector.load %arg6[%c0_17, %c0_18, %c0_19] : memref<1x1x96xf32, #tpu.memory_space<vmem>>, vector<1x1x96xf32>
    %36 = vector.shape_cast %35 : vector<1x1x96xf32> to vector<1x96xf32>
    %37 = vector.broadcast %36 : vector<1x96xf32> to vector<21x96xf32>
    %38 = arith.addf %34, %37 : vector<21x96xf32>
    %cst_20 = arith.constant 0.000000e+00 : f32
    %39 = vector.broadcast %cst_20 : f32 to vector<1x21xf32>
    %40 = vector.extract_strided_slice %38 {offsets = [0, 0], sizes = [21, 8], strides = [1, 1]} : vector<21x96xf32> to vector<21x8xf32>
    %41 = vector.extract_strided_slice %38 {offsets = [0, 32], sizes = [21, 8], strides = [1, 1]} : vector<21x96xf32> to vector<21x8xf32>
    %42 = vector.extract_strided_slice %38 {offsets = [0, 64], sizes = [21, 8], strides = [1, 1]} : vector<21x96xf32> to vector<21x8xf32>
    %43 = arith.truncf %40 : vector<21x8xf32> to vector<21x8xbf16>
    %44 = tpu.transpose %41, [1, 0] : vector<21x8xf32> -> vector<8x21xf32>
    %45 = arith.truncf %44 : vector<8x21xf32> to vector<8x21xbf16>
    %cst_21 = arith.constant dense<0.000000e+00> : vector<21x21xf32>
    %46 = tpu.matmul %43, %45, %cst_21 {dimension_numbers = #tpu.dot_dimension_numbers<[1], [0], [0], [1], [0, 0, 1, 1], [], []>} : vector<21x8xbf16>, vector<8x21xbf16>, vector<21x21xf32> -> vector<21x21xf32>
    %cst_22 = arith.constant 0.353553385 : f32
    %47 = vector.broadcast %cst_22 : f32 to vector<21x21xf32>
    %48 = arith.mulf %46, %47 : vector<21x21xf32>
    %cst_23 = arith.constant dense<0xFF800000> : vector<21xf32>
    %49 = vector.multi_reduction <maximumf>, %48, %cst_23 [1] : vector<21x21xf32> to vector<21xf32>
    %50 = vector.shape_cast %49 : vector<21xf32> to vector<21x1xf32>
    %51 = vector.broadcast %50 : vector<21x1xf32> to vector<21x21xf32>
    %52 = arith.subf %48, %51 : vector<21x21xf32>
    %53 = math.exp %52 : vector<21x21xf32>
    %cst_24 = arith.constant dense<0.000000e+00> : vector<21xf32>
    %54 = vector.multi_reduction <add>, %53, %cst_24 [1] : vector<21x21xf32> to vector<21xf32>
    %55 = vector.shape_cast %54 : vector<21xf32> to vector<21x1xf32>
    %56 = vector.broadcast %55 : vector<21x1xf32> to vector<21x21xf32>
    %57 = arith.divf %53, %56 : vector<21x21xf32>
    %58 = vector.extract_strided_slice %57 {offsets = [0, 0], sizes = [1, 21], strides = [1, 1]} : vector<21x21xf32> to vector<1x21xf32>
    %59 = arith.addf %39, %58 : vector<1x21xf32>
    %60 = arith.truncf %57 : vector<21x21xf32> to vector<21x21xbf16>
    %61 = arith.truncf %42 : vector<21x8xf32> to vector<21x8xbf16>
    %cst_25 = arith.constant dense<0.000000e+00> : vector<21x8xf32>
    %62 = tpu.matmul %60, %61, %cst_25 {dimension_numbers = #tpu.dot_dimension_numbers<[1], [0], [0], [1], [0, 0, 1, 1], [], []>} : vector<21x21xbf16>, vector<21x8xbf16>, vector<21x8xf32> -> vector<21x8xf32>
    %63 = vector.extract_strided_slice %38 {offsets = [0, 8], sizes = [21, 8], strides = [1, 1]} : vector<21x96xf32> to vector<21x8xf32>
    %64 = vector.extract_strided_slice %38 {offsets = [0, 40], sizes = [21, 8], strides = [1, 1]} : vector<21x96xf32> to vector<21x8xf32>
    %65 = vector.extract_strided_slice %38 {offsets = [0, 72], sizes = [21, 8], strides = [1, 1]} : vector<21x96xf32> to vector<21x8xf32>
    %66 = arith.truncf %63 : vector<21x8xf32> to vector<21x8xbf16>
    %67 = tpu.transpose %64, [1, 0] : vector<21x8xf32> -> vector<8x21xf32>
    %68 = arith.truncf %67 : vector<8x21xf32> to vector<8x21xbf16>
    %cst_26 = arith.constant dense<0.000000e+00> : vector<21x21xf32>
    %69 = tpu.matmul %66, %68, %cst_26 {dimension_numbers = #tpu.dot_dimension_numbers<[1], [0], [0], [1], [0, 0, 1, 1], [], []>} : vector<21x8xbf16>, vector<8x21xbf16>, vector<21x21xf32> -> vector<21x21xf32>
    %cst_27 = arith.constant 0.353553385 : f32
    %70 = vector.broadcast %cst_27 : f32 to vector<21x21xf32>
    %71 = arith.mulf %69, %70 : vector<21x21xf32>
    %cst_28 = arith.constant dense<0xFF800000> : vector<21xf32>
    %72 = vector.multi_reduction <maximumf>, %71, %cst_28 [1] : vector<21x21xf32> to vector<21xf32>
    %73 = vector.shape_cast %72 : vector<21xf32> to vector<21x1xf32>
    %74 = vector.broadcast %73 : vector<21x1xf32> to vector<21x21xf32>
    %75 = arith.subf %71, %74 : vector<21x21xf32>
    %76 = math.exp %75 : vector<21x21xf32>
    %cst_29 = arith.constant dense<0.000000e+00> : vector<21xf32>
    %77 = vector.multi_reduction <add>, %76, %cst_29 [1] : vector<21x21xf32> to vector<21xf32>
    %78 = vector.shape_cast %77 : vector<21xf32> to vector<21x1xf32>
    %79 = vector.broadcast %78 : vector<21x1xf32> to vector<21x21xf32>
    %80 = arith.divf %76, %79 : vector<21x21xf32>
    %81 = vector.extract_strided_slice %80 {offsets = [0, 0], sizes = [1, 21], strides = [1, 1]} : vector<21x21xf32> to vector<1x21xf32>
    %82 = arith.addf %59, %81 : vector<1x21xf32>
    %83 = arith.truncf %80 : vector<21x21xf32> to vector<21x21xbf16>
    %84 = arith.truncf %65 : vector<21x8xf32> to vector<21x8xbf16>
    %cst_30 = arith.constant dense<0.000000e+00> : vector<21x8xf32>
    %85 = tpu.matmul %83, %84, %cst_30 {dimension_numbers = #tpu.dot_dimension_numbers<[1], [0], [0], [1], [0, 0, 1, 1], [], []>} : vector<21x21xbf16>, vector<21x8xbf16>, vector<21x8xf32> -> vector<21x8xf32>
    %86 = vector.extract_strided_slice %38 {offsets = [0, 16], sizes = [21, 8], strides = [1, 1]} : vector<21x96xf32> to vector<21x8xf32>
    %87 = vector.extract_strided_slice %38 {offsets = [0, 48], sizes = [21, 8], strides = [1, 1]} : vector<21x96xf32> to vector<21x8xf32>
    %88 = vector.extract_strided_slice %38 {offsets = [0, 80], sizes = [21, 8], strides = [1, 1]} : vector<21x96xf32> to vector<21x8xf32>
    %89 = arith.truncf %86 : vector<21x8xf32> to vector<21x8xbf16>
    %90 = tpu.transpose %87, [1, 0] : vector<21x8xf32> -> vector<8x21xf32>
    %91 = arith.truncf %90 : vector<8x21xf32> to vector<8x21xbf16>
    %cst_31 = arith.constant dense<0.000000e+00> : vector<21x21xf32>
    %92 = tpu.matmul %89, %91, %cst_31 {dimension_numbers = #tpu.dot_dimension_numbers<[1], [0], [0], [1], [0, 0, 1, 1], [], []>} : vector<21x8xbf16>, vector<8x21xbf16>, vector<21x21xf32> -> vector<21x21xf32>
    %cst_32 = arith.constant 0.353553385 : f32
    %93 = vector.broadcast %cst_32 : f32 to vector<21x21xf32>
    %94 = arith.mulf %92, %93 : vector<21x21xf32>
    %cst_33 = arith.constant dense<0xFF800000> : vector<21xf32>
    %95 = vector.multi_reduction <maximumf>, %94, %cst_33 [1] : vector<21x21xf32> to vector<21xf32>
    %96 = vector.shape_cast %95 : vector<21xf32> to vector<21x1xf32>
    %97 = vector.broadcast %96 : vector<21x1xf32> to vector<21x21xf32>
    %98 = arith.subf %94, %97 : vector<21x21xf32>
    %99 = math.exp %98 : vector<21x21xf32>
    %cst_34 = arith.constant dense<0.000000e+00> : vector<21xf32>
    %100 = vector.multi_reduction <add>, %99, %cst_34 [1] : vector<21x21xf32> to vector<21xf32>
    %101 = vector.shape_cast %100 : vector<21xf32> to vector<21x1xf32>
    %102 = vector.broadcast %101 : vector<21x1xf32> to vector<21x21xf32>
    %103 = arith.divf %99, %102 : vector<21x21xf32>
    %104 = vector.extract_strided_slice %103 {offsets = [0, 0], sizes = [1, 21], strides = [1, 1]} : vector<21x21xf32> to vector<1x21xf32>
    %105 = arith.addf %82, %104 : vector<1x21xf32>
    %106 = arith.truncf %103 : vector<21x21xf32> to vector<21x21xbf16>
    %107 = arith.truncf %88 : vector<21x8xf32> to vector<21x8xbf16>
    %cst_35 = arith.constant dense<0.000000e+00> : vector<21x8xf32>
    %108 = tpu.matmul %106, %107, %cst_35 {dimension_numbers = #tpu.dot_dimension_numbers<[1], [0], [0], [1], [0, 0, 1, 1], [], []>} : vector<21x21xbf16>, vector<21x8xbf16>, vector<21x8xf32> -> vector<21x8xf32>
    %109 = vector.extract_strided_slice %38 {offsets = [0, 24], sizes = [21, 8], strides = [1, 1]} : vector<21x96xf32> to vector<21x8xf32>
    %110 = vector.extract_strided_slice %38 {offsets = [0, 56], sizes = [21, 8], strides = [1, 1]} : vector<21x96xf32> to vector<21x8xf32>
    %111 = vector.extract_strided_slice %38 {offsets = [0, 88], sizes = [21, 8], strides = [1, 1]} : vector<21x96xf32> to vector<21x8xf32>
    %112 = arith.truncf %109 : vector<21x8xf32> to vector<21x8xbf16>
    %113 = tpu.transpose %110, [1, 0] : vector<21x8xf32> -> vector<8x21xf32>
    %114 = arith.truncf %113 : vector<8x21xf32> to vector<8x21xbf16>
    %cst_36 = arith.constant dense<0.000000e+00> : vector<21x21xf32>
    %115 = tpu.matmul %112, %114, %cst_36 {dimension_numbers = #tpu.dot_dimension_numbers<[1], [0], [0], [1], [0, 0, 1, 1], [], []>} : vector<21x8xbf16>, vector<8x21xbf16>, vector<21x21xf32> -> vector<21x21xf32>
    %cst_37 = arith.constant 0.353553385 : f32
    %116 = vector.broadcast %cst_37 : f32 to vector<21x21xf32>
    %117 = arith.mulf %115, %116 : vector<21x21xf32>
    %cst_38 = arith.constant dense<0xFF800000> : vector<21xf32>
    %118 = vector.multi_reduction <maximumf>, %117, %cst_38 [1] : vector<21x21xf32> to vector<21xf32>
    %119 = vector.shape_cast %118 : vector<21xf32> to vector<21x1xf32>
    %120 = vector.broadcast %119 : vector<21x1xf32> to vector<21x21xf32>
    %121 = arith.subf %117, %120 : vector<21x21xf32>
    %122 = math.exp %121 : vector<21x21xf32>
    %cst_39 = arith.constant dense<0.000000e+00> : vector<21xf32>
    %123 = vector.multi_reduction <add>, %122, %cst_39 [1] : vector<21x21xf32> to vector<21xf32>
    %124 = vector.shape_cast %123 : vector<21xf32> to vector<21x1xf32>
    %125 = vector.broadcast %124 : vector<21x1xf32> to vector<21x21xf32>
    %126 = arith.divf %122, %125 : vector<21x21xf32>
    %127 = vector.extract_strided_slice %126 {offsets = [0, 0], sizes = [1, 21], strides = [1, 1]} : vector<21x21xf32> to vector<1x21xf32>
    %128 = arith.addf %105, %127 : vector<1x21xf32>
    %129 = arith.truncf %126 : vector<21x21xf32> to vector<21x21xbf16>
    %130 = arith.truncf %111 : vector<21x8xf32> to vector<21x8xbf16>
    %cst_40 = arith.constant dense<0.000000e+00> : vector<21x8xf32>
    %131 = tpu.matmul %129, %130, %cst_40 {dimension_numbers = #tpu.dot_dimension_numbers<[1], [0], [0], [1], [0, 0, 1, 1], [], []>} : vector<21x21xbf16>, vector<21x8xbf16>, vector<21x8xf32> -> vector<21x8xf32>
    %132 = tpu.concatenate %62, %85, %108, %131 in 1 : vector<21x8xf32>, vector<21x8xf32>, vector<21x8xf32>, vector<21x8xf32> -> vector<21x32xf32>
    %133 = arith.truncf %132 : vector<21x32xf32> to vector<21x32xbf16>
    %c0_41 = arith.constant 0 : index
    %c0_42 = arith.constant 0 : index
    %c0_43 = arith.constant 0 : index
    %134 = vector.load %arg7[%c0_41, %c0_42, %c0_43] : memref<1x32x32xbf16, #tpu.memory_space<vmem>>, vector<1x32x32xbf16>
    %135 = vector.shape_cast %134 : vector<1x32x32xbf16> to vector<32x32xbf16>
    %cst_44 = arith.constant dense<0.000000e+00> : vector<21x32xf32>
    %136 = tpu.matmul %133, %135, %cst_44 {dimension_numbers = #tpu.dot_dimension_numbers<[1], [0], [0], [1], [0, 0, 1, 1], [], []>} : vector<21x32xbf16>, vector<32x32xbf16>, vector<21x32xf32> -> vector<21x32xf32>
    %c0_45 = arith.constant 0 : index
    %c0_46 = arith.constant 0 : index
    %c0_47 = arith.constant 0 : index
    %137 = vector.load %arg8[%c0_45, %c0_46, %c0_47] : memref<1x1x32xf32, #tpu.memory_space<vmem>>, vector<1x1x32xf32>
    %138 = vector.shape_cast %137 : vector<1x1x32xf32> to vector<1x32xf32>
    %139 = vector.broadcast %138 : vector<1x32xf32> to vector<21x32xf32>
    %140 = arith.addf %136, %139 : vector<21x32xf32>
    %141 = arith.addf %4, %140 : vector<21x32xf32>
    %c0_48 = arith.constant 0 : index
    %c0_49 = arith.constant 0 : index
    %c0_50 = arith.constant 0 : index
    %142 = vector.load %arg9[%c0_48, %c0_49, %c0_50] : memref<1x1x32xf32, #tpu.memory_space<vmem>>, vector<1x1x32xf32>
    %143 = vector.shape_cast %142 : vector<1x1x32xf32> to vector<1x32xf32>
    %c0_51 = arith.constant 0 : index
    %c0_52 = arith.constant 0 : index
    %c0_53 = arith.constant 0 : index
    %144 = vector.load %arg10[%c0_51, %c0_52, %c0_53] : memref<1x1x32xf32, #tpu.memory_space<vmem>>, vector<1x1x32xf32>
    %145 = vector.shape_cast %144 : vector<1x1x32xf32> to vector<1x32xf32>
    %cst_54 = arith.constant dense<0.000000e+00> : vector<21xf32>
    %146 = vector.multi_reduction <add>, %141, %cst_54 [1] : vector<21x32xf32> to vector<21xf32>
    %147 = vector.shape_cast %146 : vector<21xf32> to vector<21x1xf32>
    %cst_55 = arith.constant 3.200000e+01 : f32
    %148 = vector.broadcast %cst_55 : f32 to vector<21x1xf32>
    %149 = arith.divf %147, %148 : vector<21x1xf32>
    %150 = vector.broadcast %149 : vector<21x1xf32> to vector<21x32xf32>
    %151 = arith.subf %141, %150 : vector<21x32xf32>
    %152 = arith.mulf %151, %151 : vector<21x32xf32>
    %cst_56 = arith.constant dense<0.000000e+00> : vector<21xf32>
    %153 = vector.multi_reduction <add>, %152, %cst_56 [1] : vector<21x32xf32> to vector<21xf32>
    %154 = vector.shape_cast %153 : vector<21xf32> to vector<21x1xf32>
    %cst_57 = arith.constant 3.200000e+01 : f32
    %155 = vector.broadcast %cst_57 : f32 to vector<21x1xf32>
    %156 = arith.divf %154, %155 : vector<21x1xf32>
    %157 = vector.broadcast %149 : vector<21x1xf32> to vector<21x32xf32>
    %158 = arith.subf %141, %157 : vector<21x32xf32>
    %cst_58 = arith.constant 9.99999997E-7 : f32
    %159 = vector.broadcast %cst_58 : f32 to vector<21x1xf32>
    %160 = arith.addf %156, %159 : vector<21x1xf32>
    %161 = math.rsqrt %160 : vector<21x1xf32>
    %162 = vector.broadcast %161 : vector<21x1xf32> to vector<21x32xf32>
    %163 = arith.mulf %158, %162 : vector<21x32xf32>
    %164 = vector.broadcast %143 : vector<1x32xf32> to vector<21x32xf32>
    %165 = arith.mulf %163, %164 : vector<21x32xf32>
    %166 = vector.broadcast %145 : vector<1x32xf32> to vector<21x32xf32>
    %167 = arith.addf %165, %166 : vector<21x32xf32>
    %168 = arith.truncf %167 : vector<21x32xf32> to vector<21x32xbf16>
    %c0_59 = arith.constant 0 : index
    %c0_60 = arith.constant 0 : index
    %c0_61 = arith.constant 0 : index
    %169 = vector.load %arg11[%c0_59, %c0_60, %c0_61] : memref<1x32x128xbf16, #tpu.memory_space<vmem>>, vector<1x32x128xbf16>
    %170 = vector.shape_cast %169 : vector<1x32x128xbf16> to vector<32x128xbf16>
    %cst_62 = arith.constant dense<0.000000e+00> : vector<21x128xf32>
    %171 = tpu.matmul %168, %170, %cst_62 {dimension_numbers = #tpu.dot_dimension_numbers<[1], [0], [0], [1], [0, 0, 1, 1], [], []>} : vector<21x32xbf16>, vector<32x128xbf16>, vector<21x128xf32> -> vector<21x128xf32>
    %c0_63 = arith.constant 0 : index
    %c0_64 = arith.constant 0 : index
    %c0_65 = arith.constant 0 : index
    %172 = vector.load %arg12[%c0_63, %c0_64, %c0_65] : memref<1x1x128xf32, #tpu.memory_space<vmem>>, vector<1x1x128xf32>
    %173 = vector.shape_cast %172 : vector<1x1x128xf32> to vector<1x128xf32>
    %174 = vector.broadcast %173 : vector<1x128xf32> to vector<21x128xf32>
    %175 = arith.addf %171, %174 : vector<21x128xf32>
    %cst_66 = arith.constant 5.000000e-01 : f32
    %176 = vector.broadcast %cst_66 : f32 to vector<21x128xf32>
    %177 = arith.mulf %176, %175 : vector<21x128xf32>
    %cst_67 = arith.constant 0.707106769 : f32
    %178 = vector.broadcast %cst_67 : f32 to vector<21x128xf32>
    %179 = arith.mulf %175, %178 : vector<21x128xf32>
    %180 = math.erf %179 : vector<21x128xf32>
    %cst_68 = arith.constant 1.000000e+00 : f32
    %181 = vector.broadcast %cst_68 : f32 to vector<21x128xf32>
    %182 = arith.addf %181, %180 : vector<21x128xf32>
    %183 = arith.mulf %177, %182 : vector<21x128xf32>
    %184 = arith.truncf %183 : vector<21x128xf32> to vector<21x128xbf16>
    %c0_69 = arith.constant 0 : index
    %c0_70 = arith.constant 0 : index
    %c0_71 = arith.constant 0 : index
    %185 = vector.load %arg13[%c0_69, %c0_70, %c0_71] : memref<1x128x32xbf16, #tpu.memory_space<vmem>>, vector<1x128x32xbf16>
    %186 = vector.shape_cast %185 : vector<1x128x32xbf16> to vector<128x32xbf16>
    %cst_72 = arith.constant dense<0.000000e+00> : vector<21x32xf32>
    %187 = tpu.matmul %184, %186, %cst_72 {dimension_numbers = #tpu.dot_dimension_numbers<[1], [0], [0], [1], [0, 0, 1, 1], [], []>} : vector<21x128xbf16>, vector<128x32xbf16>, vector<21x32xf32> -> vector<21x32xf32>
    %c0_73 = arith.constant 0 : index
    %c0_74 = arith.constant 0 : index
    %c0_75 = arith.constant 0 : index
    %188 = vector.load %arg14[%c0_73, %c0_74, %c0_75] : memref<1x1x32xf32, #tpu.memory_space<vmem>>, vector<1x1x32xf32>
    %189 = vector.shape_cast %188 : vector<1x1x32xf32> to vector<1x32xf32>
    %190 = vector.broadcast %189 : vector<1x32xf32> to vector<21x32xf32>
    %191 = arith.addf %187, %190 : vector<21x32xf32>
    %192 = arith.addf %141, %191 : vector<21x32xf32>
    %c0_76 = arith.constant 0 : index
    %c0_77 = arith.constant 0 : index
    %c0_78 = arith.constant 0 : index
    %193 = vector.load %arg15[%c0_76, %c0_77, %c0_78] : memref<1x21x32xf32, #tpu.memory_space<vmem>>, vector<1x21x32xf32>
    %194 = vector.shape_cast %193 : vector<1x21x32xf32> to vector<21x32xf32>
    %195 = vector.shape_cast %192 : vector<21x32xf32> to vector<1x21x32xf32>
    tpu.vector_store %arg15[%c0_76, %c0_77, %c0_78], %195 {strides = array<i32>} : memref<1x21x32xf32, #tpu.memory_space<vmem>>, vector<1x21x32xf32>,
    %196 = vector.extract_strided_slice %128 {offsets = [0, 1], sizes = [1, 20], strides = [1, 1]} : vector<1x21xf32> to vector<1x20xf32>
    %cst_79 = arith.constant 2.500000e-01 : f32
    %197 = vector.broadcast %cst_79 : f32 to vector<1x20xf32>
    %198 = arith.mulf %196, %197 : vector<1x20xf32>
    %c0_80 = arith.constant 0 : index
    %c0_81 = arith.constant 0 : index
    %c0_82 = arith.constant 0 : index
    %199 = vector.load %arg16[%c0_80, %c0_81, %c0_82] : memref<1x1x20xf32, #tpu.memory_space<vmem>>, vector<1x1x20xf32>
    %200 = vector.shape_cast %199 : vector<1x1x20xf32> to vector<1x20xf32>
    %cst_83 = arith.constant 5.000000e-01 : f32
    %201 = vector.broadcast %cst_83 : f32 to vector<1x20xf32>
    %202 = arith.mulf %201, %200 : vector<1x20xf32>
    %cst_84 = arith.constant 5.000000e-01 : f32
    %203 = vector.broadcast %cst_84 : f32 to vector<1x20xf32>
    %204 = arith.mulf %203, %198 : vector<1x20xf32>
    %205 = arith.addf %202, %204 : vector<1x20xf32>
    %c0_85 = arith.constant 0 : index
    %c0_86 = arith.constant 0 : index
    %c0_87 = arith.constant 0 : index
    %206 = vector.load %arg16[%c0_85, %c0_86, %c0_87] : memref<1x1x20xf32, #tpu.memory_space<vmem>>, vector<1x1x20xf32>
    %207 = vector.shape_cast %206 : vector<1x1x20xf32> to vector<1x20xf32>
    %208 = vector.shape_cast %205 : vector<1x20xf32> to vector<1x1x20xf32>
    tpu.vector_store %arg16[%c0_85, %c0_86, %c0_87], %208 {strides = array<i32>} : memref<1x1x20xf32, #tpu.memory_space<vmem>>, vector<1x1x20xf32>,
    return
  }
  func.func @transform_0(%arg0: i32, %arg1: i32) -> (i32, i32, i32) {
    %c0_i32 = arith.constant 0 : i32
    %c0_i32_0 = arith.constant 0 : i32
    %c0_i32_1 = arith.constant 0 : i32
    return %arg0, %c0_i32, %c0_i32_0 : i32, i32, i32
  }
  func.func @transform_1(%arg0: i32, %arg1: i32) -> (i32, i32, i32) {
    %c0_i32 = arith.constant 0 : i32
    %c0_i32_0 = arith.constant 0 : i32
    %c0_i32_1 = arith.constant 0 : i32
    return %arg1, %c0_i32, %c0_i32_0 : i32, i32, i32
  }
  func.func @transform_2(%arg0: i32, %arg1: i32) -> (i32, i32, i32) {
    %c0_i32 = arith.constant 0 : i32
    %c0_i32_0 = arith.constant 0 : i32
    %c0_i32_1 = arith.constant 0 : i32
    return %arg1, %c0_i32, %c0_i32_0 : i32, i32, i32
  }
  func.func @transform_3(%arg0: i32, %arg1: i32) -> (i32, i32, i32) {
    %c0_i32 = arith.constant 0 : i32
    %c0_i32_0 = arith.constant 0 : i32
    %c0_i32_1 = arith.constant 0 : i32
    return %arg1, %c0_i32, %c0_i32_0 : i32, i32, i32
  }
  func.func @transform_4(%arg0: i32, %arg1: i32) -> (i32, i32, i32) {
    %c0_i32 = arith.constant 0 : i32
    %c0_i32_0 = arith.constant 0 : i32
    %c0_i32_1 = arith.constant 0 : i32
    return %arg1, %c0_i32, %c0_i32_0 : i32, i32, i32
  }
  func.func @transform_5(%arg0: i32, %arg1: i32) -> (i32, i32, i32) {
    %c0_i32 = arith.constant 0 : i32
    %c0_i32_0 = arith.constant 0 : i32
    %c0_i32_1 = arith.constant 0 : i32
    return %arg1, %c0_i32, %c0_i32_0 : i32, i32, i32
  }
  func.func @transform_6(%arg0: i32, %arg1: i32) -> (i32, i32, i32) {
    %c0_i32 = arith.constant 0 : i32
    %c0_i32_0 = arith.constant 0 : i32
    %c0_i32_1 = arith.constant 0 : i32
    return %arg1, %c0_i32, %c0_i32_0 : i32, i32, i32
  }
  func.func @transform_7(%arg0: i32, %arg1: i32) -> (i32, i32, i32) {
    %c0_i32 = arith.constant 0 : i32
    %c0_i32_0 = arith.constant 0 : i32
    %c0_i32_1 = arith.constant 0 : i32
    return %arg1, %c0_i32, %c0_i32_0 : i32, i32, i32
  }
  func.func @transform_8(%arg0: i32, %arg1: i32) -> (i32, i32, i32) {
    %c0_i32 = arith.constant 0 : i32
    %c0_i32_0 = arith.constant 0 : i32
    %c0_i32_1 = arith.constant 0 : i32
    return %arg1, %c0_i32, %c0_i32_0 : i32, i32, i32
  }
  func.func @transform_9(%arg0: i32, %arg1: i32) -> (i32, i32, i32) {
    %c0_i32 = arith.constant 0 : i32
    %c0_i32_0 = arith.constant 0 : i32
    %c0_i32_1 = arith.constant 0 : i32
    return %arg1, %c0_i32, %c0_i32_0 : i32, i32, i32
  }
  func.func @transform_10(%arg0: i32, %arg1: i32) -> (i32, i32, i32) {
    %c0_i32 = arith.constant 0 : i32
    %c0_i32_0 = arith.constant 0 : i32
    %c0_i32_1 = arith.constant 0 : i32
    return %arg1, %c0_i32, %c0_i32_0 : i32, i32, i32
  }
  func.func @transform_11(%arg0: i32, %arg1: i32) -> (i32, i32, i32) {
    %c0_i32 = arith.constant 0 : i32
    %c0_i32_0 = arith.constant 0 : i32
    %c0_i32_1 = arith.constant 0 : i32
    return %arg1, %c0_i32, %c0_i32_0 : i32, i32, i32
  }
  func.func @transform_12(%arg0: i32, %arg1: i32) -> (i32, i32, i32) {
    %c0_i32 = arith.constant 0 : i32
    %c0_i32_0 = arith.constant 0 : i32
    %c0_i32_1 = arith.constant 0 : i32
    return %arg1, %c0_i32, %c0_i32_0 : i32, i32, i32
  }
  func.func @transform_13(%arg0: i32, %arg1: i32) -> (i32, i32, i32) {
    %c0_i32 = arith.constant 0 : i32
    %c0_i32_0 = arith.constant 0 : i32
    %c0_i32_1 = arith.constant 0 : i32
    return %arg0, %c0_i32, %c0_i32_0 : i32, i32, i32
  }
  func.func @transform_14(%arg0: i32, %arg1: i32) -> (i32, i32, i32) {
    %c0_i32 = arith.constant 0 : i32
    %c0_i32_0 = arith.constant 0 : i32
    %c0_i32_1 = arith.constant 0 : i32
    return %arg0, %c0_i32, %c0_i32_0 : i32, i32, i32
  }
}

</mosaic_0001>

<bundles_post_ra>
// kernel: neg.1
= control target key start
LH: loop header
LB: loop body
LE: loop exit
PB: predicated region body
PF: predicated region fallthrough
CT: control target
= control target key end

     0   :  { %2 = vsyncpa [#allocation1], 0  ;;  %s42_s6 = smov [#allocation0]   ;;  %s59_s0 = inlined_call_operand.hbm [shape: f32[2,8], index: 0, kind: input, shape index: {}]   ;;  %s60_s1 = inlined_call_operand.vmem [shape: f32[2,8], index: 1, kind: output, shape index: {}]  }
   0x1   :  { %s7_s7 = sshll.u32 %s42_s6, 4  ;;  %s8_s7 = int_to_ptr.vmem [resolvable:$true] %s7_s7 }
   0x2   :  { %s28_s8 = scalar_lea.vmem %s8_s7, 32  ;;  %p33_p1 = scmp.lt.s32.totalorder %s8_s7, %s8_s7 }
   0x3   :  { %p29_p0 = scmp.ne.s32.totalorder %s8_s7, %s28_s8  ;;  %p34_p2 = scmp.lt.s32.totalorder %s28_s8, %s28_s8 }
   0x5   :  { %p35_p3 = por %p34_p2, %p33_p1 }
   0x7   :  { %p36_p4 = pnand %p35_p3, %p29_p0 }
   0x9   :  { %39 = shalt.err (!%p36_p4)
}
   0xa   :  { %10 = dma.hbm_to_vmem [thread:$0]  %s59_s0, 32, %s8_s7, [#allocation1]  }
   0xb   :  { %40 = dma.done.wait [#allocation1], 32  }
   0xc   :  { %41 = vsyncadd [#allocation1], 4294967264  ;;  %v12_v0 = vld [vmem:[#allocation0] sm:$0x3] }
   0xd   :  { %v15_v1 = vxor.u32 2147483648, %v12_v0 }
   0xf   :  { %17 = vst [vmem:[%s60_s1] sm:$0x3] %v15_v1 }
  0x10   :  { %18 = vsyncpa [#allocation1], 1 }

// kernel: stage_forward.1
= control target key start
LH: loop header
LB: loop body
LE: loop exit
PB: predicated region body
PF: predicated region fallthrough
CT: control target
= control target key end

     0   :  { %s3420_s0 = inlined_call_operand.vmem [shape: f32[2,21,32], index: 0, kind: input, shape index: {}]   ;;  %s3421_s1 = inlined_call_operand.vmem [shape: f32[2,1,32], index: 1, kind: input, shape index: {}]   ;;  %s3422_s2 = inlined_call_operand.vmem [shape: f32[2,1,32], index: 2, kind: input, shape index: {}]   ;;  %s3423_s3 = inlined_call_operand.vmem [shape: bf16[2,32,96], index: 3, kind: input, shape index: {}]   ;;  %s3424_s4 = inlined_call_operand.vmem [shape: f32[2,1,96], index: 4, kind: input, shape index: {}]   ;;  %s3425_s5 = inlined_call_operand.vmem [shape: bf16[2,32,32], index: 5, kind: input, shape index: {}]   ;;  %s3426_s6 = inlined_call_operand.vmem [shape: f32[2,1,32], index: 6, kind: input, shape index: {}]   ;;  %s3427_s7 = inlined_call_operand.vmem [shape: f32[2,1,32], index: 7, kind: input, shape index: {}]   ;;  %s3428_s8 = inlined_call_operand.vmem [shape: f32[2,1,32], index: 8, kind: input, shape index: {}]   ;;  %s3429_s9 = inlined_call_operand.vmem [shape: bf16[2,32,128], index: 9, kind: input, shape index: {}]   ;;  %s3430_s10 = inlined_call_operand.vmem [shape: f32[2,1,128], index: 10, kind: input, shape index: {}]   ;;  %s3431_s11 = inlined_call_operand.vmem [shape: bf16[2,128,32], index: 11, kind: input, shape index: {}]   ;;  %s3432_s12 = inlined_call_operand.vmem [shape: f32[2,1,32], index: 12, kind: input, shape index: {}]   ;;  %s3433_s13 = inlined_call_operand.vmem [shape: f32[2,21,32], index: 13, kind: output, shape index: {0}]   ;;  %s3434_s14 = inlined_call_operand.hbm [shape: f32[2,1,20], index: 14, kind: output, shape index: {1}]  }
   0x1   :  { %3448 = sst [smem:[#allocation17_spill]] %s3420_s0 }
   0x2   :  { %3449 = sst [smem:[#allocation18_spill]] %s3421_s1 }
   0x3   :  { %3450 = sst [smem:[#allocation19_spill]] %s3422_s2 }
   0x4   :  { %3451 = sst [smem:[#allocation20_spill]] %s3423_s3 }
   0x5   :  { %3452 = sst [smem:[#allocation21_spill]] %s3425_s5 }
   0x6   :  { %3453 = sst [smem:[#allocation22_spill]] %s3433_s13 }
   0x7   :  { %3454 = sst [smem:[#allocation23_spill]] %s3434_s14 }
   0x8   :  { %20 = vsyncpa [#allocation3], 0 }
   0x9   :  { %22 = vsyncpa [#allocation3 + $0x1], 0  ;;  %s2963_s29 = smov 0   ;;  %s2965_s30 = smov 0  }
   0xa   :  { %s2967_s15 = smov 0   ;;  %s2969_s16 = smov 0  }
   0xb   :  { %s2971_s17 = smov 0   ;;  %s2973_s18 = smov 0  }
   0xc   :  { %s2975_s19 = smov 0   ;;  %s2977_s20 = smov 0  }
   0xd LB: > { %3455 = sst [smem:[#allocation5_spill]] %s2839_s29  ;;  %s2334_s21 = sadd.s32 4294967295, %s2867_s20   ;;  %s2867_s20 = sphi %s2977_s20, %s28_s20   ;;  %s2863_s19 = sphi %s2975_s19, %s3498_s19   ;;  %s2859_s18 = sphi %s2973_s18, %s3497_s18   ;;  %s2855_s17 = sphi %s2971_s17, %s3496_s17   ;;  %s2851_s16 = sphi %s2969_s16, %s3495_s16   ;;  %s2847_s15 = sphi %s2967_s15, %s3494_s15   ;;  %s2843_s30 = sphi %s2965_s30, %s3500_s30   ;;  %s2839_s29 = sphi %s2963_s29, %s3499_s29  }
   0xe   : > { %3456 = sst [smem:[#allocation6_spill]] %s2847_s15  ;;  %s2335_s22 = sadd.s32 4294967294, %s2867_s20  }
   0xf   : > { %3457 = sst [smem:[#allocation7_spill]] %s2851_s16  ;;  %s37_s23 = sadd.s32 1, %s2859_s18 }
  0x10   : > { %3458 = sst [smem:[#allocation8_spill]] %s2855_s17  ;;  %p38_p0 = scmp.ge.s32.totalorder %s37_s23, 2 }
  0x11   : > { %3459 = sst [smem:[#allocation9_spill]] %s2859_s18  ;;  %s40_s24 = sadd.s32 1, %s2863_s19 }
  0x12   : > { %3460 = sst [smem:[#allocation10_spill]] %s2863_s19  ;;  %p421_p1 = scmp.ne.s32.totalorder %s2847_s15, %s2843_s30 }
  0x13   : > { %3461 = sst [smem:[#allocation11_spill]] %s2867_s20  ;;  %p422_p2 = scmp.eq.s32.totalorder %s2334_s21, 3 }
  0x14   : > { %s3502_s23 = smov (%p38_p0, %s37_s23), 0  ;;  %s3504_s24 = smov (!%p38_p0, %s40_s24), %s2863_s19 }
  0x15   : > { %3462 = sst [smem:[#allocation12_spill]] %s3502_s23  ;;  %p3012_p3 = por %p422_p2, %p421_p1 }
  0x16   : > { %p427_p4 = scmp.ne.s32.totalorder %s2843_s30, %s2839_s29  ;;  %p42_p5 = scmp.ge.s32.totalorder %s3504_s24, 2 }
  0x17   : > { %s3463_s25 = scalar_select %p3012_p3, 1, 0 }
  0x18   : > { %p428_p6 = scmp.eq.s32.totalorder %s2335_s22, 3  ;;  %p2338_p7 = scmp.ge.s32.totalorder %s2867_s20, 1 }
  0x19   : > { %3464 = sst [smem:[#allocation13_spill]] %s3463_s25  ;;  %p534_p8 = scmp.lt.s32.totalorder %s2867_s20, 5 }
  0x1a   : > { %s3506_s24 = smov (%p42_p5, %s3504_s24), 0  ;;  %p3022_p9 = por %p428_p6, %p427_p4 }
  0x1b   : > { %3465 = sst [smem:[#allocation14_spill]] %s3506_s24  ;;  %p535_p10 = pnand %p2338_p7, %p534_p8 }
  0x1c   : > { %s3466_s26 = scalar_select %p3022_p9, 1, 0 }
  0x1d   : > { %s408_s27 = ssub.s32 %s2863_s19, %s3506_s24  ;;  %s411_s28 = sadd.s32 1, %s2847_s15 }
  0x1e   : > { %3467 = sst [smem:[#allocation15_spill]] %s3466_s26  ;;  %p409_p11 = scmp.eq.s32.totalorder %s408_s27, 0 }
  0x1f   : > { %538 = sbr.rel (%p535_p10) target bundleno = 2694 (0xa86), region = 72  ;;  %p628_p12 = scmp.lt.s32.totalorder (!%p535_p10), %s2855_s17, 1 }
  0x20   : > { %s3030_s21 = scalar_select %p409_p11, %s2847_s15, %s411_s28  }
  0x21   : > { %p633_p13 = scmp.lt.s32.totalorder (!%p535_p10), %s2851_s16, 1  ;;  %s3471_s0 = sld [smem:[#allocation17_spill]] (!%p535_p10) }
  0x22   : > { %3468 = sst [smem:[#allocation16_spill]] %s3030_s21 }
  0x23   : > { %s3472_s3 = sld [smem:[#allocation20_spill]] (!%p535_p10) }
  0x24   : > { %s629_s23 = scalar_select %p628_p12, %s2855_s17, 1 }
  0x25   : > { %s3037_s18 = scalar_select %p633_p13, %s2851_s16, 1 }
  0x26   : > { %s2555_s27 = smul.u32 24, %s629_s23  ;;  %s3473_s5 = sld [smem:[#allocation21_spill]] }
  0x27   : > { %s2397_s14 = sshll.u32 %s3037_s18, 4  ;;  %s668_s24 = scalar_lea.vmem %s3430_s10, %s3037_s18 }
  0x28   : > { %s632_s20 = scalar_lea.vmem %s3471_s0, %s2555_s27  ;;  %s3080_s23 = scalar_lea.vmem %s3429_s9, %s2397_s14 }
  0x29   : > { %s3054_s16 = scalar_lea.vmem %s3472_s3, %s2397_s14  ;;  %s676_s29 = scalar_lea.vmem %s3432_s12, %s3037_s18 }
  0x2a   : > { %s3474_s3 = sld [smem:[#allocation22_spill]] }
  0x2b   : > { %s3476_s22 = sld [smem:[#allocation7_spill]] }
  0x2c   : > { %s3063_s19 = scalar_lea.vmem %s3473_s5, %s2397_s14  ;;  %s2400_s5 = sshll.u32 %s3037_s18, 6 }
  0x2d   : > { %s3094_s2 = scalar_lea.vmem %s3431_s11, %s2400_s5  ;;  %s3475_s14 = sand.u32 1, %s2843_s30  }
  0x2e   : > { %s3103_s13 = scalar_lea.vmem [#allocation2], %s3475_s14 }
  0x30   : > { %s3099_s1 = scalar_lea.vmem %s3474_s3, %s2555_s27 }
  0x31   : > { %p2349_p0 = scmp.ne.s32.totalorder %s3476_s22, 0 }
  0x33   : > { %686 = sbr.rel (%p2349_p0) target bundleno = 60 (0x3c), region = 76 }
  0x38   : > { %v687_v0 = vld [vmem:[%s632_s20] sm:$0xff]  ;;  %vm690_vm0 = vcmask 261120   ;;  %v688_v1 = vld [vmem:[%s632_s20 + $0x8] sm:$0xff]  ;;  %v689_v2 = vld [vmem:[%s632_s20 + $0x10] sm:$0x1f]  ;;  %vm693_vm1 = vcmask 258048  }
  0x39   : > { %691 = vst.msk [vmem:[%s3099_s1] sm:$0xff] %vm690_vm0, %v687_v0  ;;  %692 = vst.msk [vmem:[%s3099_s1 + $0x8] sm:$0xff] %vm690_vm0, %v688_v1  ;;  %vm695_vm2 = vcmask 155648   ;;  %v2869_v3 = vmov 0.0  }
  0x3a   : > { %694 = vst.msk [vmem:[%s3099_s1 + $0x10] sm:$0x1f] %vm693_vm1, %v689_v2 }
  0x3b   : > { %696 = vst.msk [vmem:[%s3103_s13] sm:$0x1] %vm695_vm2, %v2869_v3 }
  0x3c PF: > { %vm702_vm3 = vcmask 261120   ;;  %vm709_vm4 = vcmask 258048   ;;  %v2692_v25 = vld [vmem:[%s3054_s16 + $0x8] sm:$0xff]   ;;  %v2693_v26 = vld [vmem:[%s3054_s16] sm:$0xff]   ;;  %s3477_s16 = sld [smem:[#allocation18_spill]]  ;;  %s3481_s17 = scalar_lea.vmem %s3424_s4, %s3037_s18  ;;  %vm888_vm5 = vcmask 64512  }
  0x3d   : > { %2451 = vmatprep.subr.bf16.mxu1 %v2692_v25  ;;  %s3479_s15 = sld [smem:[#allocation19_spill]]  ;;  %v2352_v52 = vld [vmem:[%s3481_s17] ss:$0 sm:$0xff]  ;;  %s2870_s25 = smov 96   ;;  %vm895_vm6 = vcmask 1043456   ;;  %vm1001_vm7 = vcmask 1041408  }
  0x3e   : > { %2452 = vmatpush3.bf16.msra.mxu1 %v2692_v25  ;;  %s2871_s14 = smov 88   ;;  %s2872_s22 = smov 80   ;;  %vm1002_vm8 = vcmask 1042432   ;;  %vm957_vm9 = vcmask 167936   ;;  %vm950_vm10 = vcmask 171008   ;;  %vm1707_vm11 = vcmask 130048  }
  0x3f   : > { %2453 = vmatprep.subr.bf16.mxu1 %v2693_v26  ;;  %s2873_s3 = smov 72   ;;  %s2874_s5 = smov 120   ;;  %vm1711_vm12 = vcmask 195584   ;;  %vm2100_vm13 = vcmask 155648  }
  0x40   : > { %v697_v4 = vld [vmem:[%s3099_s1] sm:$0xff]  ;;  %v698_v6 = vld [vmem:[%s3099_s1 + $0x8] sm:$0xff]  ;;  %s2877_s27 = smov 64   ;;  %s2879_s28 = smov 56  }
  0x41   : > { %v699_v5 = vld [vmem:[%s3099_s1 + $0x10] sm:$0x1f]  ;;  %v703_v7 = vsel %vm702_vm3, %v697_v4, 0.0  ;;  %v706_v9 = vsel %vm702_vm3, %v698_v6, 0.0  ;;  %s2882_s0 = smov 8   ;;  %s2883_s26 = smov 16  }
  0x42   : > { %v710_v8 = vsel %vm709_vm4, %v699_v5, 0.0  ;;  %704 = vadd.xlane.f32.xlu0 %v703_v7  ;;  %2454 = vmatpush3.bf16.msra.mxu1 %v2693_v26  ;;  %s3478_s20 = scalar_lea.vmem %s3477_s16, %s3037_s18  ;;  %s2875_s16 = smov 112  }
  0x43   : > { %711 = vadd.xlane.f32.xlu1 %v710_v8  ;;  %v2350_v38 = vld [vmem:[%s3478_s20] ss:$0 sm:$0xff]  ;;  %s3480_s21 = scalar_lea.vmem %s3479_s15, %s3037_s18  ;;  %s2876_s20 = smov 104  }
  0x44   : > { %v2351_v44 = vld [vmem:[%s3480_s21] ss:$0 sm:$0xff]  ;;  %s2880_s15 = smov 48   ;;  %s2881_s21 = smov 40  }
  0x45   : > { %s2884_s17 = smov 24  }
  0x46   : > { %707 = vadd.xlane.f32.xlu0 %v706_v9 }
  0xcb   : > { %v705_v10 = vpop.xlane.xlu0 %704 }
  0xcc   : > { %v712_v11 = vpop.xlane.xlu1 %711  ;;  %v714_v12 = vmul.f32 0.03125, %v705_v10 }
  0xcd   : > { %v716_v13 = vmul.f32 0.03125, %v712_v11 }
  0xce   : > { %v717_v14 = vsub.f32 %v697_v4, %v714_v12 }
  0xcf   : > { %v719_v15 = vsub.f32 %v699_v5, %v716_v13  ;;  %v708_v16 = vpop.xlane.xlu0 %707 }
  0xd0   : > { %v715_v17 = vmul.f32 0.03125, %v708_v16  ;;  %v720_v18 = vmul.f32 %v717_v14, %v717_v14 }
  0xd1   : > { %v722_v19 = vmul.f32 %v719_v15, %v719_v15 }
  0xd2   : > { %v718_v20 = vsub.f32 %v698_v6, %v715_v17  ;;  %v723_v21 = vsel %vm702_vm3, %v720_v18, 0.0 }
  0xd3   : > { %724 = vadd.xlane.f32.xlu1 %v723_v21  ;;  %v729_v22 = vsel %vm709_vm4, %v722_v19, 0.0 }
  0xd4   : > { %v721_v23 = vmul.f32 %v718_v20, %v718_v20 }
  0xd6   : > { %v726_v24 = vsel %vm702_vm3, %v721_v23, 0.0 }
  0xd7   : > { %730 = vadd.xlane.f32.xlu1 %v729_v22  ;;  %727 = vadd.xlane.f32.xlu0 %v726_v24 }
 0x15c   : > { %v725_v27 = vpop.xlane.xlu1 %724 }
 0x15d   : > { %v732_v28 = vmul.f32 0.03125, %v725_v27 }
 0x15f   : > { %v735_v29 = vadd.f32 1e-06, %v732_v28 }
 0x160   : > { %v731_v30 = vpop.xlane.xlu1 %730  ;;  %v728_v31 = vpop.xlane.xlu0 %727 }
 0x161   : > { %2706 = vrsqrt.f32 %v735_v29  ;;  %v734_v32 = vmul.f32 0.03125, %v731_v30  ;;  %v733_v33 = vmul.f32 0.03125, %v728_v31 }
 0x163   : > { %v737_v34 = vadd.f32 1e-06, %v734_v32  ;;  %v736_v35 = vadd.f32 1e-06, %v733_v33 }
 0x165   : > { %2708 = vrsqrt.f32 %v737_v34 }
 0x166   : > { %2710 = vrsqrt.f32 %v736_v35 }
 0x16e   : > { %v2707_v36 = vpop.eup %2706 }
 0x16f   : > { %v741_v37 = vmul.f32 %v2707_v36, %v717_v14 }
 0x171   : > { %v750_v43 = vmul.f32 %v2350_v38, %v741_v37  ;;  %v2878_v37 = vmov 65535  }
 0x172   : > { %v2709_v39 = vpop.eup %2708 }
 0x173   : > { %v2711_v40 = vpop.eup %2710  ;;  %v743_v41 = vmul.f32 %v2709_v39, %v719_v15  ;;  %v759_v48 = vadd.f32 %v2351_v44, %v750_v43 }
 0x174   : > { %v742_v42 = vmul.f32 %v2711_v40, %v718_v20 }
 0x175   : > { %v752_v45 = vmul.f32 %v2350_v38, %v743_v41 }
 0x176   : > { %v751_v46 = vmul.f32 %v2350_v38, %v742_v42  ;;  %v1003_v38 = vsel %vm1001_vm7, 4294967295, %v2878_v37 }
 0x177   : > { %v761_v47 = vadd.f32 %v2351_v44, %v752_v45  ;;  %v3168_v39 = vsel %vm1002_vm8, %v1003_v38, 0 }
 0x178   : > { %v760_v49 = vadd.f32 %v2351_v44, %v751_v46 }
 0x179   : > { %v763_v50 = vpack.c.bf16 %v761_v47, %v761_v47 }
 0x17a   : > { %v762_v51 = vpack.c.bf16 %v760_v49, %v759_v48 }
 0x17c   : > { %2455 = vmatprep.mubr.msk.bf16.mxu1 %vm702_vm3, %v762_v51 }
 0x17d   : > { %2456 = vmatmul.mubr.msk.bf16.vlgmr.msra.gmra.mxu1 %vm702_vm3, %v763_v50 }
 0x23d   : > { %v2457_v53 = vpop.f32.mrf.mxu1 }
 0x23e   : > { %v836_v54 = vadd.f32 %v2457_v53, %v2352_v52 }
 0x23f   : > { %v827_v55 = vpop.f32.mrf.mxu1 }
 0x240   : > { %850 = vrot.lane.b32.xlu1 %v836_v54, %s2870_s25  ;;  %v828_v58 = vadd.f32 %v2352_v52, %v827_v55  ;;  %v3142_v62 = vpack.c.bf16 %v836_v54, %v836_v54 }
 0x241   : > { %v2458_v56 = vpop.f32.mrf.mxu1 }
 0x243   : > { %v830_v57 = vpop.f32.mrf.mxu1 }
 0x244   : > { %v831_v59 = vadd.f32 %v2352_v52, %v830_v57  ;;  %1060 = vrot.lane.b32.xlu1 %v836_v54, %s2871_s14 }
 0x246   : > { %v3138_v60 = vpack.c.bf16 %v831_v59, %v828_v58  ;;  %v2651_v61 = vpack.i.bf16 %v831_v59, %v828_v58 }
 0x248   : > { %2652 = vrot.lane.b32.xlu1 %v2651_v61, %s2871_s14  ;;  %2647 = vrot.lane.b32.xlu0 %v2651_v61, %s2870_s25  ;;  %s3482_s14 = scalar_lea.vmem %s3426_s6, %s3037_s18 }
 0x249   : > { %2461 = vmatprep.mubr.msk.bf16.mxu1 %vm888_vm5, %v3138_v60 }
 0x24c   : > { %1264 = vrot.lane.b32.xlu1 %v836_v54, %s2872_s22  ;;  %2657 = vrot.lane.b32.xlu0 %v2651_v61, %s2872_s22  ;;  %s2886_s22 = smov 127  }
 0x250   : > { %1468 = vrot.lane.b32.xlu1 %v836_v54, %s2873_s3  ;;  %2662 = vrot.lane.b32.xlu0 %v2651_v61, %s2873_s3 }
 0x254   : > { %1100 = vrot.lane.b32.xlu1 %v3142_v62, %s2874_s5  ;;  %1098 = vrot.lane.b32.xlu0 %v3138_v60, %s2874_s5  ;;  %s3483_s5 = scalar_lea.vmem %s3427_s7, %s3037_s18 }
 0x258   : > { %1304 = vrot.lane.b32.xlu1 %v3142_v62, %s2875_s16  ;;  %1302 = vrot.lane.b32.xlu0 %v3138_v60, %s2875_s16 }
 0x25c   : > { %1506 = vrot.lane.b32.xlu1 %v3138_v60, %s2876_s20 }
 0x260   : > { %1508 = vrot.lane.b32.xlu1 %v3142_v62, %s2876_s20 }
 0x2b2   : > { %v851_v63 = vpop.permute.xlu1 %850 }
 0x2b6   : > { %v1061_v0 = vpop.permute.xlu1 %1060 }
 0x2b7   : > { %v2670_v13 = vpack.i.bf16 %v1061_v0, %v851_v63 }
 0x2ba   : > { %v2653_v1 = vpop.permute.xlu1 %2652  ;;  %v2648_v2 = vpop.permute.xlu0 %2647 }
 0x2bb   : > { %v2654_v3 = vunpack.i.l.bf16 %v2653_v1  ;;  %v2649_v4 = vunpack.i.l.bf16 %v2648_v2  ;;  %v2655_v5 = vunpack.i.h.bf16 %v2653_v1  ;;  %v2650_v6 = vunpack.i.h.bf16 %v2648_v2 }
 0x2bd   : > { %v2666_v7 = vpack.i.bf16 %v2654_v3, %v2649_v4  ;;  %v2668_v10 = vpack.i.bf16 %v2655_v5, %v2650_v6 }
 0x2be   : > { %v2658_v8 = vpop.permute.xlu0 %2657  ;;  %v1265_v15 = vpop.permute.xlu1 %1264 }
 0x2bf   : > { %2667 = vxpose.xlu0.b32.start [1/3] (short) (narrow) %v2666_v7, 8  ;;  %v2659_v9 = vunpack.i.l.bf16 %v2658_v8  ;;  %v2660_v12 = vunpack.i.h.bf16 %v2658_v8 }
 0x2c1   : > { %1269 = vxpose.xlu1.b32.start [1/3] (short) (narrow) %v2659_v9, 8 }
 0x2c2   : > { %v2663_v11 = vpop.permute.xlu0 %2662  ;;  %v1469_v18 = vpop.permute.xlu1 %1468 }
 0x2c3   : > { %2669 = vxpose.xlu0.b32.cont [2/3] (short) (narrow) %v2668_v10, 8  ;;  %v2664_v16 = vunpack.i.l.bf16 %v2663_v11  ;;  %v2665_v17 = vunpack.i.h.bf16 %v2663_v11 }
 0x2c5   : > { %1270 = vxpose.xlu1.b32.cont [2/3] (short) (narrow) %v2660_v12, 8 }
 0x2c6   : > { %v1099_v14 = vpop.permute.xlu0 %1098  ;;  %v1101_v19 = vpop.permute.xlu1 %1100 }
 0x2c7   : > { %2671 = vxpose.xlu0.b32.end [3/3] (short) (narrow) %v2670_v13, 8  ;;  %2475 = vmatprep.mubr.msk.bf16.mxu0 %vm888_vm5, %v1099_v14 }
 0x2c9   : > { %1271 = vxpose.xlu1.b32.end [3/3] (short) (narrow) %v1265_v15, 8 }
 0x2ca   : > { %v1305_v20 = vpop.permute.xlu1 %1304  ;;  %v1303_v22 = vpop.permute.xlu0 %1302 }
 0x2cb   : > { %1473 = vxpose.xlu0.b32.start [1/3] (short) (narrow) %v2664_v16, 8 }
 0x2ce   : > { %v1507_v21 = vpop.permute.xlu1 %1506 }
 0x2cf   : > { %1474 = vxpose.xlu0.b32.cont [2/3] (short) (narrow) %v2665_v17, 8 }
 0x2d2   : > { %v1509_v23 = vpop.permute.xlu1 %1508 }
 0x2d3   : > { %1475 = vxpose.xlu0.b32.end [3/3] (short) (narrow) %v1469_v18, 8 }
 0x2fc   : > { %992 = vrot.lane.b32.xlu0 %v3142_v62, %s2877_s27 }
 0x33b   : > { %v2672_v24 = vpop.trf.xlu0 }
 0x33c   : > { %v2673_v25 = vunpack.i.l.bf16 %v2672_v24  ;;  %v2676_v26 = vunpack.i.h.bf16 %v2672_v24 }
 0x33d   : > { %v1285_v27 = vpop.trf.xlu1 }
 0x33e   : > { %v887_v28 = vpack.c.bf16 %v2673_v25, %v2673_v25  ;;  %v1097_v29 = vpack.c.bf16 %v2676_v26, %v2676_v26  ;;  %v1301_v30 = vpack.c.bf16 %v1285_v27, %v1285_v27 }
 0x340   : > { %2551 = vmatprep.subr.msk.bf16.mxu1 %vm895_vm6, %v887_v28  ;;  %2552 = vmatprep.subr.msk.bf16.mxu0 %vm895_vm6, %v1097_v29  ;;  %v897_v31 = vsel %vm895_vm6, %v887_v28, 0  ;;  %v1109_v32 = vsel %vm895_vm6, %v1097_v29, 0  ;;  %v1313_v33 = vsel %vm895_vm6, %v1301_v30, 0 }
 0x341   : > { %2460 = vmatpush3.bf16.msra.mxu1 %v897_v31  ;;  %2474 = vmatpush3.bf16.msra.mxu0 %v1109_v32 }
 0x342   : > { %2553 = vmatprep.subr.msk.bf16.mxu0 %vm895_vm6, %v1301_v30 }
 0x344   : > { %2462 = vmatmul.mubr.msk.bf16.vlgmr.msra.gmra.mxu1 %vm888_vm5, %v3142_v62  ;;  %2476 = vmatmul.mubr.msk.bf16.vlgmr.msra.gmra.mxu0 %vm888_vm5, %v1101_v19 }
 0x345   : > { %2489 = vmatprep.mubr.msk.bf16.mxu0 %vm888_vm5, %v1303_v22  ;;  %2488 = vmatpush3.bf16.msra.mxu0 %v1313_v33 }
 0x347   : > { %v1489_v34 = vpop.trf.xlu0 }
 0x348   : > { %v1505_v35 = vpack.c.bf16 %v1489_v34, %v1489_v34 }
 0x34a   : > { %v1517_v36 = vsel %vm895_vm6, %v1505_v35, 0  ;;  %2554 = vmatprep.subr.msk.bf16.mxu0 %vm895_vm6, %v1505_v35 }
 0x34c   : > { %2490 = vmatmul.mubr.msk.bf16.vlgmr.msra.gmra.mxu0 %vm888_vm5, %v1305_v20 }
 0x34d   : > { %2503 = vmatprep.mubr.msk.bf16.mxu0 %vm888_vm5, %v1507_v21  ;;  %2502 = vmatpush3.bf16.msra.mxu0 %v1517_v36 }
 0x354   : > { %2504 = vmatmul.mubr.msk.bf16.vlgmr.msra.gmra.mxu0 %vm888_vm5, %v1509_v23 }
 0x36e   : > { %v993_v40 = vpop.permute.xlu0 %992 }
 0x36f   : > { %v1006_v41 = vand.u32 %v3168_v39, %v993_v40 }
 0x371   : > { %2465 = vmatprep.subr.bf16.mxu1 %v1006_v41 }
 0x372   : > { %2466 = vmatpush3.bf16.msra.mxu1 %v1006_v41 }
 0x404   : > { %v2463_v42 = vpop.f32.mrf.mxu1  ;;  %v2477_v43 = vpop.f32.mrf.mxu0 }
 0x405   : > { %v949_v44 = vmul.f32 0.35355338, %v2463_v42  ;;  %v1161_v47 = vmul.f32 0.35355338, %v2477_v43 }
 0x406   : > { %v933_v45 = vpop.f32.mrf.mxu1  ;;  %v1145_v46 = vpop.f32.mrf.mxu0 }
 0x407   : > { %v958_v48 = vsel %vm957_vm9, %v949_v44, -inf  ;;  %v947_v53 = vmul.f32 0.35355338, %v933_v45  ;;  %v1168_v55 = vsel %vm957_vm9, %v1161_v47, -inf  ;;  %v1159_v59 = vmul.f32 0.35355338, %v1145_v46 }
 0x408   : > { %v2478_v49 = vpop.f32.mrf.mxu0  ;;  %959 = vmax.xlane.f32.xlu0 %v958_v48  ;;  %v2464_v50 = vpop.f32.mrf.mxu1 }
 0x409   : > { %v951_v61 = vsel %vm950_vm10, %v947_v53, -inf  ;;  %v1162_v2 = vsel %vm950_vm10, %v1159_v59, -inf }
 0x40a   : > { %v936_v51 = vpop.f32.mrf.mxu1  ;;  %v1148_v52 = vpop.f32.mrf.mxu0 }
 0x40b   : > { %v948_v54 = vmul.f32 0.35355338, %v936_v51  ;;  %v1160_v11 = vmul.f32 0.35355338, %v1148_v52 }
 0x40c   : > { %v2491_v56 = vpop.f32.mrf.mxu0  ;;  %1169 = vmax.xlane.f32.xlu0 %v1168_v55 }
 0x40d   : > { %v954_v57 = vsel %vm950_vm10, %v948_v54, -inf  ;;  %v3192_v12 = vmul.f32 0.35355338, %v2491_v56  ;;  %v1165_v13 = vsel %vm950_vm10, %v1160_v11, -inf }
 0x40e   : > { %v1349_v58 = vpop.f32.mrf.mxu0  ;;  %955 = vmax.xlane.f32.xlu1 %v954_v57 }
 0x40f   : > { %v3195_v14 = vmul.f32 0.35355338, %v1349_v58  ;;  %v1372_v15 = vsel %vm957_vm9, %v3192_v12, -inf }
 0x410   : > { %v2492_v63 = vpop.f32.mrf.mxu0  ;;  %952 = vmax.xlane.f32.xlu0 %v951_v61 }
 0x411   : > { %v1366_v18 = vsel %vm950_vm10, %v3195_v14, -inf }
 0x412   : > { %v1352_v0 = vpop.f32.mrf.mxu0 }
 0x413   : > { %v3175_v1 = vmul.f32 0.35355338, %v1352_v0 }
 0x414   : > { %v2505_v3 = vpop.f32.mrf.mxu0  ;;  %1163 = vmax.xlane.f32.xlu0 %v1162_v2 }
 0x415   : > { %v3178_v5 = vmul.f32 0.35355338, %v2505_v3  ;;  %v1369_v6 = vsel %vm950_vm10, %v3175_v1, -inf }
 0x416   : > { %v1553_v4 = vpop.f32.mrf.mxu0 }
 0x417   : > { %v3182_v8 = vmul.f32 0.35355338, %v1553_v4  ;;  %v1576_v9 = vsel %vm957_vm9, %v3178_v5, -inf }
 0x418   : > { %v2506_v7 = vpop.f32.mrf.mxu0  ;;  %1370 = vmax.xlane.f32.xlu0 %v1369_v6 }
 0x419   : > { %v1570_v10 = vsel %vm950_vm10, %v3182_v8, -inf }
 0x41a   : > { %v1556_v16 = vpop.f32.mrf.mxu0 }
 0x41b   : > { %v3199_v17 = vmul.f32 0.35355338, %v1556_v16 }
 0x41c   : > { %1577 = vmax.xlane.f32.xlu0 %v1576_v9 }
 0x41d   : > { %v1573_v19 = vsel %vm950_vm10, %v3199_v17, -inf }
 0x41f   : > { %990 = vrot.lane.b32.xlu1 %v3138_v60, %s2877_s27  ;;  %s3484_s27 = scalar_lea.vmem %s3428_s8, %s3037_s18 }
 0x420   : > { %1571 = vmax.xlane.f32.xlu0 %v1570_v10 }
 0x436   : > { %1200 = vrot.lane.b32.xlu0 %v3142_v62, %s2879_s28 }
 0x443   : > { %1166 = vmax.xlane.f32.xlu1 %v1165_v13 }
 0x447   : > { %1373 = vmax.xlane.f32.xlu1 %v1372_v15 }
 0x44b   : > { %1367 = vmax.xlane.f32.xlu1 %v1366_v18 }
 0x44f   : > { %1574 = vmax.xlane.f32.xlu1 %v1573_v19 }
 0x491   : > { %v960_v20 = vpop.xlane.xlu0 %959 }
 0x492   : > { %v963_v21 = vsub.f32 %v949_v44, %v960_v20 }
 0x494   : > { %v968_v22 = vmul.f32 1.442695, %v963_v21 }
 0x495   : > { %v1170_v23 = vpop.xlane.xlu0 %1169 }
 0x496   : > { %2712 = vpow2.f32 %v968_v22  ;;  %v1173_v24 = vsub.f32 %v1161_v47, %v1170_v23 }
 0x497   : > { %v956_v25 = vpop.xlane.xlu1 %955 }
 0x498   : > { %v1178_v26 = vmul.f32 1.442695, %v1173_v24  ;;  %v962_v30 = vsub.f32 %v948_v54, %v956_v25 }
 0x499   : > { %v953_v27 = vpop.xlane.xlu0 %952 }
 0x49a   : > { %2714 = vpow2.f32 %v1178_v26  ;;  %v961_v28 = vsub.f32 %v947_v53, %v953_v27  ;;  %v966_v34 = vmul.f32 1.442695, %v962_v30 }
 0x49b   : > { %v991_v29 = vpop.permute.xlu1 %990 }
 0x49c   : > { %v964_v31 = vmul.f32 1.442695, %v961_v28  ;;  %2467 = vmatprep.subr.bf16.mxu1 %v991_v29 }
 0x49d   : > { %v1164_v32 = vpop.xlane.xlu0 %1163  ;;  %2468 = vmatpush3.bf16.msra.mxu1 %v991_v29 }
 0x49e   : > { %2716 = vpow2.f32 %v964_v31  ;;  %v1171_v33 = vsub.f32 %v1159_v59, %v1164_v32 }
 0x4a0   : > { %v1174_v35 = vmul.f32 1.442695, %v1171_v33 }
 0x4a1   : > { %v1371_v36 = vpop.xlane.xlu0 %1370 }
 0x4a2   : > { %2718 = vpow2.f32 %v1174_v35  ;;  %v1376_v55 = vsub.f32 %v3175_v1, %v1371_v36 }
 0x4a3   : > { %v3205_v37 = vpop.eup %2712  ;;  %2720 = vpow2.f32 %v966_v34 }
 0x4a4   : > { %v976_v38 = vsel %vm957_vm9, %v3205_v37, 0.0  ;;  %v1380_v59 = vmul.f32 1.442695, %v1376_v55 }
 0x4a5   : > { %v1578_v40 = vpop.xlane.xlu0 %1577  ;;  %977 = vadd.xlane.f32.xlu1 %v976_v38 }
 0x4a6   : > { %v1581_v63 = vsub.f32 %v3178_v5, %v1578_v40 }
 0x4a7   : > { %v3209_v41 = vpop.eup %2714 }
 0x4a8   : > { %v1186_v42 = vsel %vm957_vm9, %v3209_v41, 0.0  ;;  %v1586_v3 = vmul.f32 1.442695, %v1581_v63 }
 0x4a9   : > { %1187 = vadd.xlane.f32.xlu0 %v1186_v42  ;;  %v1572_v43 = vpop.xlane.xlu0 %1571 }
 0x4aa   : > { %v1579_v4 = vsub.f32 %v3182_v8, %v1572_v43 }
 0x4ab   : > { %v3213_v44 = vpop.eup %2716 }
 0x4ac   : > { %v970_v45 = vsel %vm950_vm10, %v3213_v44, 0.0  ;;  %v1582_v1 = vmul.f32 1.442695, %v1579_v4 }
 0x4ad   : > { %v1201_v46 = vpop.permute.xlu0 %1200  ;;  %971 = vadd.xlane.f32.xlu1 %v970_v45 }
 0x4ae   : > { %v3218_v47 = vand.u32 %v1201_v46, %v3168_v39 }
 0x4af   : > { %v3220_v48 = vpop.eup %2718 }
 0x4b0   : > { %2479 = vmatprep.subr.bf16.mxu1 %v3218_v47  ;;  %v1180_v49 = vsel %vm950_vm10, %v3220_v48, 0.0  ;;  %v3225_v50 = vpop.eup %2720 }
 0x4b1   : > { %1181 = vadd.xlane.f32.xlu0 %v1180_v49  ;;  %v973_v51 = vsel %vm950_vm10, %v3225_v50, 0.0 }
 0x4b5   : > { %974 = vadd.xlane.f32.xlu0 %v973_v51 }
 0x4be   : > { %1404 = vrot.lane.b32.xlu1 %v3142_v62, %s2880_s15 }
 0x4cb   : > { %1198 = vrot.lane.b32.xlu0 %v3138_v60, %s2879_s28 }
 0x4cc   : > { %v1167_v52 = vpop.xlane.xlu1 %1166 }
 0x4cd   : > { %v1172_v53 = vsub.f32 %v1160_v11, %v1167_v52 }
 0x4cf   : > { %v1176_v54 = vmul.f32 1.442695, %v1172_v53 }
 0x4d0   : > { %v1374_v56 = vpop.xlane.xlu1 %1373 }
 0x4d1   : > { %2722 = vpow2.f32 %v1176_v54  ;;  %v1377_v57 = vsub.f32 %v3192_v12, %v1374_v56 }
 0x4d3   : > { %v1382_v58 = vmul.f32 1.442695, %v1377_v57 }
 0x4d4   : > { %v1368_v61 = vpop.xlane.xlu1 %1367 }
 0x4d5   : > { %2724 = vpow2.f32 %v1382_v58  ;;  %v1375_v0 = vsub.f32 %v3195_v14, %v1368_v61 }
 0x4d6   : > { %2726 = vpow2.f32 %v1380_v59 }
 0x4d7   : > { %v1378_v2 = vmul.f32 1.442695, %v1375_v0 }
 0x4d8   : > { %v1575_v6 = vpop.xlane.xlu1 %1574 }
 0x4d9   : > { %2728 = vpow2.f32 %v1378_v2  ;;  %v1580_v7 = vsub.f32 %v3199_v17, %v1575_v6 }
 0x4da   : > { %2730 = vpow2.f32 %v1586_v3 }
 0x4db   : > { %2732 = vpow2.f32 %v1582_v1  ;;  %v1584_v10 = vmul.f32 1.442695, %v1580_v7 }
 0x4dd   : > { %2734 = vpow2.f32 %v1584_v10 }
 0x4de   : > { %v3239_v9 = vpop.eup %2722 }
 0x4df   : > { %v1183_v5 = vsel %vm950_vm10, %v3239_v9, 0.0 }
 0x4e2   : > { %v3243_v11 = vpop.eup %2724  ;;  %1184 = vadd.xlane.f32.xlu1 %v1183_v5 }
 0x4e3   : > { %v3245_v12 = vpop.eup %2726  ;;  %v1390_v8 = vsel %vm957_vm9, %v3243_v11, 0.0 }
 0x4e4   : > { %v1387_v14 = vsel %vm950_vm10, %v3245_v12, 0.0 }
 0x4e6   : > { %v3249_v13 = vpop.eup %2728  ;;  %1391 = vadd.xlane.f32.xlu1 %v1390_v8 }
 0x4e7   : > { %v1384_v15 = vsel %vm950_vm10, %v3249_v13, 0.0  ;;  %v3255_v16 = vpop.eup %2730 }
 0x4e8   : > { %v1594_v17 = vsel %vm957_vm9, %v3255_v16, 0.0  ;;  %v3259_v18 = vpop.eup %2732 }
 0x4e9   : > { %v1588_v19 = vsel %vm950_vm10, %v3259_v18, 0.0 }
 0x4ea   : > { %1388 = vadd.xlane.f32.xlu0 %v1387_v14  ;;  %1385 = vadd.xlane.f32.xlu1 %v1384_v15  ;;  %v3263_v20 = vpop.eup %2734 }
 0x4eb   : > { %v1591_v21 = vsel %vm950_vm10, %v3263_v20, 0.0 }
 0x4ee   : > { %1595 = vadd.xlane.f32.xlu1 %v1594_v17 }
 0x4f2   : > { %1589 = vadd.xlane.f32.xlu1 %v1588_v19 }
 0x4f6   : > { %1592 = vadd.xlane.f32.xlu1 %v1591_v21 }
 0x500   : > { %1402 = vrot.lane.b32.xlu0 %v3138_v60, %s2880_s15 }
 0x504   : > { %1606 = vrot.lane.b32.xlu0 %v3138_v60, %s2881_s21 }
 0x507   : > { %1608 = vrot.lane.b32.xlu1 %v3142_v62, %s2881_s21 }
 0x52e   : > { %v978_v22 = vpop.xlane.xlu1 %977 }
 0x532   : > { %v1188_v23 = vpop.xlane.xlu0 %1187 }
 0x536   : > { %v972_v24 = vpop.xlane.xlu1 %971 }
 0x537   : > { %2736 = vrcp.f32 %v972_v24 }
 0x53a   : > { %v1182_v25 = vpop.xlane.xlu0 %1181  ;;  %v1405_v36 = vpop.permute.xlu1 %1404 }
 0x53b   : > { %2738 = vrcp.f32 %v1182_v25  ;;  %v1414_v40 = vand.u32 %v1405_v36, %v3168_v39 }
 0x53c   : > { %2740 = vrcp.f32 %v978_v22  ;;  %v2694_v22 = vld [vmem:[%s3063_s19 + $0x8] sm:$0xff]  }
 0x53d   : > { %2515 = vmatprep.subr.bf16.mxu0 %v2694_v22 }
 0x53e   : > { %v975_v26 = vpop.xlane.xlu0 %974  ;;  %2516 = vmatpush3.bf16.msra.mxu0 %v2694_v22 }
 0x53f   : > { %2742 = vrcp.f32 %v975_v26 }
 0x540   : > { %2744 = vrcp.f32 %v1188_v23 }
 0x542   : > { %v1199_v38 = vpop.permute.xlu0 %1198 }
 0x544   : > { %v2737_v27 = vpop.eup %2736 }
 0x545   : > { %v980_v30 = vmul.f32 %v2737_v27, %v3213_v44  ;;  %v2695_v27 = vld [vmem:[%s3063_s19] sm:$0xff]  }
 0x546   : > { %2517 = vmatprep.subr.bf16.mxu0 %v2695_v27 }
 0x547   : > { %2518 = vmatpush3.bf16.msra.mxu0 %v2695_v27 }
 0x548   : > { %v2739_v28 = vpop.eup %2738 }
 0x549   : > { %v2741_v29 = vpop.eup %2740  ;;  %v1190_v31 = vmul.f32 %v2739_v28, %v3220_v48 }
 0x54a   : > { %v984_v62 = vmul.f32 %v2741_v29, %v3205_v37 }
 0x54b   : > { %v1195_v32 = vadd.f32 %v1190_v31, %v980_v30 }
 0x54c   : > { %v2743_v60 = vpop.eup %2742  ;;  %v987_v35 = vpack.c.bf16 %v984_v62, %v984_v62 }
 0x54d   : > { %v982_v33 = vmul.f32 %v2743_v60, %v3225_v50  ;;  %v2745_v45 = vpop.eup %2744 }
 0x54e   : > { %v1194_v49 = vmul.f32 %v2745_v45, %v3209_v41 }
 0x54f   : > { %v986_v34 = vpack.c.bf16 %v982_v33, %v980_v30 }
 0x550   : > { %v1197_v52 = vpack.c.bf16 %v1194_v49, %v1194_v49 }
 0x551   : > { %2469 = vmatprep.mubr.msk.bf16.mxu1 %vm950_vm10, %v986_v34 }
 0x552   : > { %2470 = vmatmul.mubr.msk.bf16.vlgmr.msra.gmra.mxu1 %vm950_vm10, %v987_v35 }
 0x553   : > { %2480 = vmatpush3.bf16.msra.mxu1 %v3218_v47 }
 0x554   : > { %2481 = vmatprep.subr.bf16.mxu1 %v1199_v38 }
 0x557   : > { %2482 = vmatpush3.bf16.msra.mxu1 %v1199_v38 }
 0x558   : > { %2493 = vmatprep.subr.bf16.mxu1 %v1414_v40 }
 0x56b   : > { %v1185_v42 = vpop.xlane.xlu1 %1184 }
 0x56c   : > { %2746 = vrcp.f32 %v1185_v42 }
 0x56f   : > { %v1392_v37 = vpop.xlane.xlu1 %1391 }
 0x570   : > { %2748 = vrcp.f32 %v1392_v37 }
 0x573   : > { %v1389_v43 = vpop.xlane.xlu0 %1388  ;;  %v1386_v44 = vpop.xlane.xlu1 %1385 }
 0x574   : > { %2750 = vrcp.f32 %v1389_v43 }
 0x575   : > { %2752 = vrcp.f32 %v1386_v44 }
 0x577   : > { %v1596_v46 = vpop.xlane.xlu1 %1595  ;;  %v1403_v55 = vpop.permute.xlu0 %1402 }
 0x579   : > { %v2747_v48 = vpop.eup %2746 }
 0x57a   : > { %v1192_v47 = vmul.f32 %v2747_v48, %v3239_v9 }
 0x57b   : > { %v1590_v50 = vpop.xlane.xlu1 %1589  ;;  %v1607_v6 = vpop.permute.xlu0 %1606 }
 0x57c   : > { %2754 = vrcp.f32 %v1590_v50  ;;  %v1196_v51 = vpack.c.bf16 %v1192_v47, %v1190_v31 }
 0x57d   : > { %2756 = vrcp.f32 %v1596_v46  ;;  %v2749_v53 = vpop.eup %2748 }
 0x57e   : > { %2483 = vmatprep.mubr.msk.bf16.mxu1 %vm950_vm10, %v1196_v51  ;;  %v1398_v58 = vmul.f32 %v2749_v53, %v3243_v11 }
 0x57f   : > { %2484 = vmatmul.mubr.msk.bf16.vlgmr.msra.gmra.mxu1 %vm950_vm10, %v1197_v52  ;;  %v1593_v54 = vpop.xlane.xlu1 %1592 }
 0x580   : > { %2494 = vmatpush3.bf16.msra.mxu1 %v1414_v40  ;;  %2758 = vrcp.f32 %v1593_v54  ;;  %v1401_v3 = vpack.c.bf16 %v1398_v58, %v1398_v58 }
 0x581   : > { %v2751_v56 = vpop.eup %2750  ;;  %2495 = vmatprep.subr.bf16.mxu1 %v1403_v55 }
 0x582   : > { %v2753_v57 = vpop.eup %2752  ;;  %v1396_v41 = vmul.f32 %v2751_v56, %v3245_v12 }
 0x583   : > { %v1609_v59 = vpop.permute.xlu1 %1608  ;;  %v1394_v61 = vmul.f32 %v2753_v57, %v3249_v13  ;;  %v2373_v57 = vld [vmem:[%s3482_s14] ss:$0 sm:$0xff]  ;;  %s2123_s14 = sshll.u32 %s3103_s13, 4  ;;  %s2124_s14 = int_to_ptr.vmem [resolvable:$true] %s2123_s14 }
 0x584   : > { %2496 = vmatpush3.bf16.msra.mxu1 %v1403_v55  ;;  %v1618_v63 = vand.u32 %v1609_v59, %v3168_v39  ;;  %s2775_s3 = scalar_lea.vmem %s2124_s14, 16 }
 0x585   : > { %v1400_v0 = vpack.c.bf16 %v1396_v41, %v1394_v61  ;;  %v1399_v2 = vadd.f32 %v1394_v61, %v1195_v32  ;;  %v2772_v61 = vld [vmem:[%s3099_s1] sm:$0xff]  ;;  %p2776_p1 = scmp.ne.s32.totalorder %s2124_s14, %s2775_s3 }
 0x586   : > { %2507 = vmatprep.subr.bf16.mxu1 %v1618_v63 }
 0x587   : > { %2497 = vmatprep.mubr.msk.bf16.mxu1 %vm950_vm10, %v1400_v0  ;;  %p2777_p2 = pnand %p2776_p1, %p3012_p3 }
 0x588   : > { %2498 = vmatmul.mubr.msk.bf16.vlgmr.msra.gmra.mxu1 %vm950_vm10, %v1401_v3 }
 0x589   : > { %v2755_v4 = vpop.eup %2754  ;;  %2508 = vmatpush3.bf16.msra.mxu1 %v1618_v63  ;;  %p2778_p4 = pneg %p2777_p2 }
 0x58a   : > { %v2757_v1 = vpop.eup %2756  ;;  %2509 = vmatprep.subr.bf16.mxu1 %v1607_v6  ;;  %v1598_v7 = vmul.f32 %v2755_v4, %v3259_v18 }
 0x58b   : > { %v1602_v39 = vmul.f32 %v2757_v1, %v3255_v16 }
 0x58c   : > { %v3290_v9 = vadd.f32 %v1598_v7, %v1399_v2 }
 0x58d   : > { %v2759_v10 = vpop.eup %2758  ;;  %2510 = vmatpush3.bf16.msra.mxu1 %v1607_v6  ;;  %v1605_v12 = vpack.c.bf16 %v1602_v39, %v1602_v39  ;;  %v2773_v6 = vld [vmem:[%s3099_s1 + $0x8] sm:$0xff] }
 0x58e   : > { %v1600_v5 = vmul.f32 %v2759_v10, %v3263_v20 }
 0x590   : > { %v1604_v11 = vpack.c.bf16 %v1600_v5, %v1598_v7  ;;  %v2774_v7 = vld [vmem:[%s3099_s1 + $0x10] sm:$0x1f] }
 0x592   : > { %2511 = vmatprep.mubr.msk.bf16.mxu1 %vm950_vm10, %v1604_v11 }
 0x593   : > { %2512 = vmatmul.mubr.msk.bf16.vlgmr.msra.gmra.mxu1 %vm950_vm10, %v1605_v12 }
 0x612   : > { %v2471_v8 = vpop.f32.mrf.mxu1 }
 0x614   : > { %v1042_v13 = vpop.f32.mrf.mxu1 }
 0x616   : > { %v2472_v14 = vpop.f32.mrf.mxu1 }
 0x618   : > { %v1045_v15 = vpop.f32.mrf.mxu1 }
 0x63f   : > { %v2485_v17 = vpop.f32.mrf.mxu1 }
 0x640   : > { %1675 = vrot.lane.b32.xlu0 %v2485_v17, %s2882_s0 }
 0x641   : > { %v1246_v18 = vpop.f32.mrf.mxu1 }
 0x643   : > { %v2486_v19 = vpop.f32.mrf.mxu1 }
 0x645   : > { %v1249_v16 = vpop.f32.mrf.mxu1 }
 0x646   : > { %v2677_v21 = vpack.i.bf16 %v1249_v16, %v1246_v18 }
 0x648   : > { %v2499_v20 = vpop.f32.mrf.mxu1  ;;  %2678 = vrot.lane.b32.xlu1 %v2677_v21, %s2882_s0 }
 0x649   : > { %1687 = vrot.lane.b32.xlu0 %v2499_v20, %s2883_s26 }
 0x64a   : > { %v1450_v23 = vpop.f32.mrf.mxu1 }
 0x64c   : > { %v2500_v24 = vpop.f32.mrf.mxu1 }
 0x64e   : > { %v1453_v25 = vpop.f32.mrf.mxu1 }
 0x64f   : > { %v2682_v26 = vpack.i.bf16 %v1453_v25, %v1450_v23  ;;  %v2885_v23 = vmov 1966171168   ;;  %v2085_v25 = vlaneseq }
 0x650   : > { %v2083_v24 = vunpack.c.l.s4 %v2885_v23 }
 0x651   : > { %2683 = vrot.lane.b32.xlu1 %v2682_v26, %s2883_s26 }
 0x653   : > { %v2513_v28 = vpop.f32.mrf.mxu1 }
 0x654   : > { %1699 = vrot.lane.b32.xlu0 %v2513_v28, %s2884_s17  ;;  %v2077_v28 = vmul.f32 0.25, %v3290_v9  ;;  %v2078_v9 = vld [vmem:[%s3103_s13] sm:$0x1] }
 0x655   : > { %v1654_v29 = vpop.f32.mrf.mxu1 }
 0x657   : > { %v2514_v30 = vpop.f32.mrf.mxu1 }
 0x658   : > { %v2086_v30 = vshrl.u32 %v2085_v25, 7 }
 0x659   : > { %v1657_v31 = vpop.f32.mrf.mxu1 }
 0x65a   : > { %v2687_v32 = vpack.i.bf16 %v1657_v31, %v1654_v29  ;;  %v2084_v29 = vunpack.c.0.s8 %v2083_v24  ;;  %v2080_v31 = vmul.f32 0.5, %v2077_v28 }
 0x65c   : > { %2688 = vrot.lane.b32.xlu1 %v2687_v32, %s2884_s17  ;;  %v2087_v32 = vsub.s32 %v2084_v29, %v2086_v30  ;;  %s3487_s17 = sld [smem:[#allocation23_spill]] }
 0x662   : > { %s3488_s25 = smov %s3487_s17 }
 0x6b2   : > { %v1676_v60 = vpop.permute.xlu0 %1675 }
 0x6b3   : > { %v1706_v42 = vsel %vm888_vm5, %v2471_v8, %v1676_v60  ;;  %v2088_v60 = vrot.slane %v2080_v31, %v2087_v32 }
 0x6ba   : > { %v2679_v62 = vpop.permute.xlu1 %2678 }
 0x6bb   : > { %v1688_v33 = vpop.permute.xlu0 %1687  ;;  %v2681_v35 = vunpack.i.h.bf16 %v2679_v62  ;;  %v2680_v36 = vunpack.i.l.bf16 %v2679_v62  ;;  %v2095_v62 = vrot.slane %v2088_v60, %v2087_v32 }
 0x6bc   : > { %v1710_v43 = vsel %vm1707_vm11, %v1706_v42, %v1688_v33  ;;  %v2696_v33 = vld [vmem:[%s3080_s23 + $0x8] sm:$0xff]  }
 0x6bd   : > { %v1705_v45 = vsel %vm888_vm5, %v1045_v15, %v2681_v35  ;;  %v1704_v46 = vsel %vm888_vm5, %v1042_v13, %v2680_v36  ;;  %2523 = vmatprep.subr.bf16.mxu1 %v2696_v33 }
 0x6be   : > { %2524 = vmatpush3.bf16.msra.mxu1 %v2696_v33 }
 0x6c3   : > { %v2684_v34 = vpop.permute.xlu1 %2683 }
 0x6c4   : > { %v2686_v38 = vunpack.i.h.bf16 %v2684_v34  ;;  %v2685_v40 = vunpack.i.l.bf16 %v2684_v34  ;;  %v2697_v34 = vld [vmem:[%s3080_s23] sm:$0xff]  }
 0x6c5   : > { %2525 = vmatprep.subr.bf16.mxu1 %v2697_v34 }
 0x6c6   : > { %v1700_v37 = vpop.permute.xlu0 %1699  ;;  %v1708_v47 = vsel %vm1707_vm11, %v1704_v46, %v2685_v40  ;;  %v1709_v50 = vsel %vm1707_vm11, %v1705_v45, %v2686_v38  ;;  %2526 = vmatpush3.bf16.msra.mxu1 %v2697_v34 }
 0x6c7   : > { %v1714_v51 = vsel %vm1711_vm12, %v1710_v43, %v1700_v37  ;;  %v2079_v37 = vmul.f32 0.5, %v2078_v9 }
 0x6c8   : > { %v1716_v55 = vpack.c.bf16 %v1714_v51, %v1714_v51  ;;  %v2378_v51 = vld [vmem:[%s3483_s5] ss:$0 sm:$0xff]  ;;  %s2887_s5 = smov [#allocation2]  }
 0x6c9   : > { %s2779_s16 = sshll.u32 %s2887_s5, 4  ;;  %s2780_s16 = int_to_ptr.vmem [resolvable:$false] %s2779_s16 }
 0x6ca   : > { %s2781_s20 = scalar_lea.vmem %s2780_s16, 32  ;;  %p2782_p5 = scmp.lt.s32.totalorder %s2124_s14, %s2780_s16 }
 0x6cb   : > { %p2783_p6 = scmp.lt.s32.totalorder %s2781_s20, %s2775_s3 }
 0x6cd   : > { %p2784_p7 = por %p2783_p6, %p2782_p5 }
 0x6ce   : > { %v2689_v44 = vpop.permute.xlu1 %2688 }
 0x6cf   : > { %v2691_v48 = vunpack.i.h.bf16 %v2689_v44  ;;  %v2690_v49 = vunpack.i.l.bf16 %v2689_v44  ;;  %p2785_p8 = pnand %p2784_p7, %p2778_p4 }
 0x6d1   : > { %v1712_v52 = vsel %vm1711_vm12, %v1708_v47, %v2690_v49  ;;  %v1713_v53 = vsel %vm1711_vm12, %v1709_v50, %v2691_v48 }
 0x6d2   : > { %v1715_v54 = vpack.c.bf16 %v1713_v53, %v1712_v52 }
 0x6d4   : > { %2519 = vmatprep.mubr.msk.bf16.mxu0 %vm702_vm3, %v1715_v54 }
 0x6d5   : > { %2520 = vmatmul.mubr.msk.bf16.vlgmr.msra.gmra.mxu0 %vm702_vm3, %v1716_v55  ;;  %v2379_v55 = vld [vmem:[%s3484_s27] ss:$0 sm:$0xff] }
 0x795   : > { %v2521_v56 = vpop.f32.mrf.mxu0 }
 0x796   : > { %v1789_v2 = vadd.f32 %v2521_v56, %v2373_v57 }
 0x797   : > { %v1780_v41 = vpop.f32.mrf.mxu0 }
 0x798   : > { %v1781_v58 = vadd.f32 %v2373_v57, %v1780_v41  ;;  %v3317_v10 = vadd.f32 %v2774_v7, %v1789_v2  ;;  %v2700_v7 = vld [vmem:[%s3094_s2 + $0x28] sm:$0xff]  }
 0x799   : > { %v2522_v59 = vpop.f32.mrf.mxu0 }
 0x79a   : > { %v3309_v63 = vadd.f32 %v2772_v61, %v1781_v58  ;;  %v1805_v5 = vsel %vm709_vm4, %v3317_v10, 0.0 }
 0x79b   : > { %v1783_v0 = vpop.f32.mrf.mxu0 }
 0x79c   : > { %v1784_v3 = vadd.f32 %v2373_v57, %v1783_v0  ;;  %v1799_v4 = vsel %vm702_vm3, %v3309_v63, 0.0 }
 0x79d   : > { %1800 = vadd.xlane.f32.xlu1 %v1799_v4  ;;  %v2698_v4 = vld [vmem:[%s3094_s2 + $0x38] sm:$0xff]  }
 0x79e   : > { %v3314_v1 = vadd.f32 %v2773_v6, %v1784_v3  ;;  %2531 = vmatprep.subr.bf16.mxu0 %v2698_v4  ;;  %v2699_v6 = vld [vmem:[%s3094_s2 + $0x30] sm:$0xff]  }
 0x79f   : > { %2532 = vmatpush3.bf16.msra.mxu0 %v2698_v4 }
 0x7a0   : > { %v1802_v39 = vsel %vm702_vm3, %v3314_v1, 0.0  ;;  %2533 = vmatprep.subr.bf16.mxu0 %v2699_v6 }
 0x7a1   : > { %1803 = vadd.xlane.f32.xlu0 %v1802_v39  ;;  %v2701_v39 = vld [vmem:[%s3094_s2 + $0x20] sm:$0xff]  }
 0x7a3   : > { %2534 = vmatpush3.bf16.msra.mxu0 %v2699_v6 }
 0x7a4   : > { %2535 = vmatprep.subr.bf16.mxu0 %v2700_v7 }
 0x7a5   : > { %1806 = vadd.xlane.f32.xlu0 %v1805_v5  ;;  %v2702_v5 = vld [vmem:[%s3094_s2 + $0x18] sm:$0xff]  }
 0x7a7   : > { %2536 = vmatpush3.bf16.msra.mxu0 %v2700_v7 }
 0x7a8   : > { %2537 = vmatprep.subr.bf16.mxu0 %v2701_v39 }
 0x7ab   : > { %2538 = vmatpush3.bf16.msra.mxu0 %v2701_v39 }
 0x7ac   : > { %2539 = vmatprep.subr.bf16.mxu0 %v2702_v5 }
 0x7af   : > { %2540 = vmatpush3.bf16.msra.mxu0 %v2702_v5 }
 0x826   : > { %v1801_v11 = vpop.xlane.xlu1 %1800 }
 0x827   : > { %v1808_v12 = vmul.f32 0.03125, %v1801_v11  ;;  %v2703_v11 = vld [vmem:[%s3094_s2 + $0x10] sm:$0xff]  }
 0x828   : > { %2541 = vmatprep.subr.bf16.mxu0 %v2703_v11 }
 0x829   : > { %v1811_v8 = vsub.f32 %v3309_v63, %v1808_v12  ;;  %2542 = vmatpush3.bf16.msra.mxu0 %v2703_v11  ;;  %v2704_v12 = vld [vmem:[%s3094_s2 + $0x8] sm:$0xff]  }
 0x82a   : > { %v1804_v13 = vpop.xlane.xlu0 %1803  ;;  %2543 = vmatprep.subr.bf16.mxu0 %v2704_v12 }
 0x82b   : > { %v1809_v14 = vmul.f32 0.03125, %v1804_v13  ;;  %v1814_v15 = vmul.f32 %v1811_v8, %v1811_v8  ;;  %v2380_v13 = vld [vmem:[%s668_s24] ss:$0 sm:$0xff] }
 0x82d   : > { %v1812_v17 = vsub.f32 %v3314_v1, %v1809_v14  ;;  %v1817_v18 = vsel %vm702_vm3, %v1814_v15, 0.0  ;;  %2544 = vmatpush3.bf16.msra.mxu0 %v2704_v12 }
 0x82e   : > { %v1807_v19 = vpop.xlane.xlu0 %1806  ;;  %1818 = vadd.xlane.f32.xlu0 %v1817_v18 }
 0x82f   : > { %v1810_v16 = vmul.f32 0.03125, %v1807_v19  ;;  %v1815_v21 = vmul.f32 %v1812_v17, %v1812_v17 }
 0x831   : > { %v1813_v20 = vsub.f32 %v3317_v10, %v1810_v16  ;;  %v1820_v22 = vsel %vm702_vm3, %v1815_v21, 0.0 }
 0x832   : > { %1821 = vadd.xlane.f32.xlu1 %v1820_v22 }
 0x833   : > { %v1816_v26 = vmul.f32 %v1813_v20, %v1813_v20 }
 0x835   : > { %v1823_v27 = vsel %vm709_vm4, %v1816_v26, 0.0 }
 0x836   : > { %1824 = vadd.xlane.f32.xlu0 %v1823_v27 }
 0x843   : > { %2096 = vrot.lane.b32.xlu1 %v2095_v62, %s2886_s22  ;;  %s3489_s22 = sand.u32 1, %s2843_s30  }
 0x844   : > { %s2108_s23 = scalar_lea.sflag [#allocation3], %s3489_s22 }
 0x8b7   : > { %v1819_v35 = vpop.xlane.xlu0 %1818 }
 0x8b8   : > { %v1826_v36 = vmul.f32 0.03125, %v1819_v35 }
 0x8ba   : > { %v1829_v38 = vadd.f32 1e-06, %v1826_v36 }
 0x8bb   : > { %v1822_v40 = vpop.xlane.xlu1 %1821 }
 0x8bc   : > { %2760 = vrsqrt.f32 %v1829_v38  ;;  %v1827_v42 = vmul.f32 0.03125, %v1822_v40 }
 0x8be   : > { %v1830_v43 = vadd.f32 1e-06, %v1827_v42 }
 0x8bf   : > { %v1825_v44 = vpop.xlane.xlu0 %1824  ;;  %v2097_v45 = vpop.permute.xlu1 %2096 }
 0x8c0   : > { %2762 = vrsqrt.f32 %v1830_v43  ;;  %v1828_v46 = vmul.f32 0.03125, %v1825_v44  ;;  %v2099_v48 = vadd.f32 %v2097_v45, %v2079_v37 }
 0x8c2   : > { %v1831_v49 = vadd.f32 1e-06, %v1828_v46  ;;  %2101 = vst.msk [vmem:[%s3103_s13] sm:$0x1] %vm2100_vm13, %v2099_v48 }
 0x8c4   : > { %2764 = vrsqrt.f32 %v1831_v49 }
 0x8c9   : > { %v2761_v47 = vpop.eup %2760 }
 0x8ca   : > { %v1835_v50 = vmul.f32 %v2761_v47, %v1811_v8  ;;  %v2705_v8 = vld [vmem:[%s3094_s2] sm:$0xff]   ;;  %s3485_s2 = sld [smem:[#allocation8_spill]] }
 0x8cb   : > { %2545 = vmatprep.subr.bf16.mxu0 %v2705_v8 }
 0x8cc   : > { %v1844_v54 = vmul.f32 %v2378_v51, %v1835_v50  ;;  %2546 = vmatpush3.bf16.msra.mxu0 %v2705_v8 }
 0x8cd   : > { %v2763_v52 = vpop.eup %2762 }
 0x8ce   : > { %v1836_v53 = vmul.f32 %v2763_v52, %v1812_v17  ;;  %v1853_v58 = vadd.f32 %v2379_v55, %v1844_v54 }
 0x8d0   : > { %v1845_v56 = vmul.f32 %v2378_v51, %v1836_v53  ;;  %s2394_s21 = sshll.u32 %s3485_s2, 4 }
 0x8d1   : > { %v2765_v57 = vpop.eup %2764  ;;  %s2121_s19 = scalar_lea.hbm %s3487_s17, %s2394_s21 }
 0x8d2   : > { %v1837_v41 = vmul.f32 %v2765_v57, %v1813_v20  ;;  %v1854_v59 = vadd.f32 %v2379_v55, %v1845_v56 }
 0x8d4   : > { %v1856_v61 = vpack.c.bf16 %v1854_v59, %v1853_v58  ;;  %v1846_v0 = vmul.f32 %v2378_v51, %v1837_v41 }
 0x8d6   : > { %2527 = vmatprep.mubr.msk.bf16.mxu1 %vm702_vm3, %v1856_v61  ;;  %v1855_v2 = vadd.f32 %v2379_v55, %v1846_v0 }
 0x8d8   : > { %v1857_v3 = vpack.c.bf16 %v1855_v2, %v1855_v2 }
 0x8da   : > { %2528 = vmatmul.mubr.msk.bf16.vlgmr.msra.gmra.mxu1 %vm702_vm3, %v1857_v3 }
 0x99a   : > { %v2529_v14 = vpop.f32.mrf.mxu1 }
 0x99b   : > { %v1930_v15 = vadd.f32 %v2529_v14, %v2380_v13 }
 0x99c   : > { %v1921_v17 = vpop.f32.mrf.mxu1 }
 0x99d   : > { %v1940_v18 = vmul.f32 0.70710677, %v1930_v15  ;;  %v1922_v19 = vadd.f32 %v2380_v13, %v1921_v17  ;;  %v1937_v29 = vmul.f32 0.5, %v1930_v15 }
 0x99e   : > { %v2530_v16 = vpop.f32.mrf.mxu1 }
 0x99f   : > { %v1938_v21 = vmul.f32 0.70710677, %v1922_v19  ;;  %2766 = verf.f32 %v1940_v18  ;;  %v1935_v30 = vmul.f32 0.5, %v1922_v19 }
 0x9a0   : > { %v1924_v20 = vpop.f32.mrf.mxu1 }
 0x9a1   : > { %2768 = verf.f32 %v1938_v21  ;;  %v1925_v22 = vadd.f32 %v2380_v13, %v1924_v20 }
 0x9a3   : > { %v1939_v23 = vmul.f32 0.70710677, %v1925_v22  ;;  %v1936_v31 = vmul.f32 0.5, %v1925_v22 }
 0x9a5   : > { %2770 = verf.f32 %v1939_v23 }
 0x9ac   : > { %v2767_v24 = vpop.eup %2766 }
 0x9ad   : > { %v1946_v26 = vadd.f32 1.0, %v2767_v24 }
 0x9ae   : > { %v2769_v25 = vpop.eup %2768 }
 0x9af   : > { %v1944_v27 = vadd.f32 1.0, %v2769_v25  ;;  %v1949_v60 = vmul.f32 %v1946_v26, %v1937_v29 }
 0x9b1   : > { %v1947_v62 = vmul.f32 %v1944_v27, %v1935_v30  ;;  %v1951_v35 = vpack.c.bf16 %v1949_v60, %v1949_v60 }
 0x9b2   : > { %v2771_v28 = vpop.eup %2770 }
 0x9b3   : > { %v1945_v32 = vadd.f32 1.0, %v2771_v28 }
 0x9b5   : > { %v1948_v33 = vmul.f32 %v1945_v32, %v1936_v31 }
 0x9b7   : > { %v1950_v34 = vpack.c.bf16 %v1948_v33, %v1947_v62 }
 0x9b9   : > { %2547 = vmatprep.mubr.bf16.mxu0 %v1950_v34 }
 0x9ba   : > { %2548 = vmatmul.mubr.bf16.vlgmr.msra.gmra.mxu0 %v1951_v35 }
 0x9bb   : > { %2788 = shalt.err (!%p2785_p8)
}
 0x9bc   : > { %s2789_s27 = scalar_lea.hbm %s2121_s19, 16  ;;  %s2793_s15 = scalar_lea.hbm %s3488_s25, 32 }
 0x9bd   : > { %p2790_p10 = scmp.ne.s32.totalorder %s2121_s19, %s2789_s27  ;;  %p2794_p13 = scmp.lt.s32.totalorder %s2121_s19, %s3488_s25 }
 0x9be   : > { %p2795_p0 = scmp.lt.s32.totalorder %s2793_s15, %s2789_s27 }
 0x9bf   : > { %p2791_p11 = pnand %p2790_p10, %p3012_p3 }
 0x9c0   : > { %p2796_p1 = por %p2795_p0, %p2794_p13 }
 0x9c1   : > { %p2792_p12 = pneg %p2791_p11 }
 0x9c3   : > { %p2797_p2 = pnand %p2796_p1, %p2792_p12 }
 0x9c5   : > { %2800 = shalt.err (!%p2797_p2)
}
 0x9c6   : > { %2556 = dma.vmem_to_hbm [thread:$0]  (%p3012_p3), %s2124_s14, 16, %s2121_s19, %s2108_s23   ;;  %v2385_v36 = vld [vmem:[%s676_s29] ss:$0 sm:$0xff] }
 0xa7a   : > { %v2549_v9 = vpop.f32.mrf.mxu0 }
 0xa7b   : > { %v2066_v38 = vadd.f32 %v2549_v9, %v2385_v36 }
 0xa7c   : > { %v2057_v40 = vpop.f32.mrf.mxu0 }
 0xa7d   : > { %v2073_v42 = vadd.f32 %v2066_v38, %v3317_v10  ;;  %v2058_v37 = vadd.f32 %v2385_v36, %v2057_v40 }
 0xa7e   : > { %v2550_v43 = vpop.f32.mrf.mxu0 }
 0xa7f   : > { %2076 = vst.msk [vmem:[%s3099_s1 + $0x10] sm:$0x1f] %vm709_vm4, %v2073_v42  ;;  %v2071_v44 = vadd.f32 %v2058_v37, %v3309_v63 }
 0xa80   : > { %v2060_v45 = vpop.f32.mrf.mxu0 }
 0xa81   : > { %2074 = vst.msk [vmem:[%s3099_s1] sm:$0xff] %vm702_vm3, %v2071_v44  ;;  %v2061_v46 = vadd.f32 %v2385_v36, %v2060_v45 }
 0xa83   : > { %v2072_v48 = vadd.f32 %v2061_v46, %v3314_v1 }
 0xa85   : > { %2075 = vst.msk [vmem:[%s3099_s1 + $0x8] sm:$0xff] %vm702_vm3, %v2072_v48 }
 0xa86 PF: > { %s3490_s18 = sld [smem:[#allocation11_spill]] }
 0xa87   : > { %s3491_s29 = sld [smem:[#allocation5_spill]] }
 0xa8c   : > { %p2562_p3 = scmp.ge.s32.totalorder %s3490_s18, 2 }
 0xa8d   : > { %s2143_s17 = sand.u32 1, %s3491_s29  }
 0xa8e   : > { %p2559_p4 = pnand %p2562_p3, %p3022_p9  ;;  %s2144_s19 = scalar_lea.sflag [#allocation3], %s2143_s17 }
 0xa90   : > { %p2560_p5 = pneg %p2559_p4 }
 0xa92   : > { %2834 = dma.done.wait (%p2560_p5), %s2144_s19, 16  }
 0xa93   : > { %2836 = vsyncadd (%p2560_p5), %s2144_s19, 4294967280  ;;  %s28_s20 = sadd.s32 1, %s3490_s18   ;;  %s3493_s14 = sld [smem:[#allocation6_spill]] }
 0xa94   : > { %p25_p6 = scmp.ge.s32.totalorder %s28_s20, 6   ;;  %s3494_s15 = sld [smem:[#allocation16_spill]] }
 0xa95   : > { %s3495_s16 = sld [smem:[#allocation9_spill]]  ;;  %s3499_s29 = smov %s2843_s30 }
 0xa96   : > { %s3496_s17 = sld [smem:[#allocation10_spill]]  ;;  %27 = sbr.rel (!%p25_p6) target bundleno = 13 (0xd), region = 159 }
 0xa97   : > { %s3497_s18 = sld [smem:[#allocation12_spill]] }
 0xa98   : > { %s3498_s19 = sld [smem:[#allocation14_spill]] }
 0xa99   : > { %s3500_s30 = smov %s3493_s14 }
 0xa9b   :  { %2148 = vsyncpa [#allocation3], 1 }
 0xa9c   :  { %2150 = vsyncpa [#allocation3 + $0x1], 1 }

</bundles_post_ra>
